<compile_context>
chip_gen: v6e
topology: v6e:2x2x1
jax: 0.10.0
libtpu: 0.0.40
codegen_flags: <defaults>
</compile_context>

<pallas_src>
import jax
import jax.numpy as jnp
from jax import lax
from jax.experimental import pallas as pl
from jax.experimental.pallas import tpu as pltpu


def bottleneck_kernel(x_ref, w1_ref, b1_ref, w2_ref, b2_ref, w3_ref, b3_ref,
                      o_ref):
    # x_ref: (H+2, W, Cin) bf16   whole H-padded image of one batch element
    # o_ref: (TH, W, Cout)        one H-tile of the output (bf16 by default)
    Hp2, W, Cin = x_ref.shape
    TH, _, Cout = o_ref.shape
    wd = w1_ref.shape[1]

    t = pl.program_id(1)
    nt = pl.num_programs(1)
    r0 = pl.multiple_of(t * TH, TH)      # first padded-x row of the halo window

    # ---- conv1 (1x1, BN scale folded into weights) + bias + relu ----------
    xw = x_ref[pl.ds(r0, TH + 2), :, :]                        # (TH+2, W, Cin) bf16
    h1 = jnp.dot(xw.reshape((TH + 2) * W, Cin), w1_ref[...],
                 preferred_element_type=jnp.float32)
    h1 = jnp.maximum(h1 + b1_ref[...], 0.0).astype(jnp.bfloat16)
    h1 = h1.reshape(TH + 2, W, wd)                             # bf16 activations

    # Zero only the two halo rows, and only when they fall outside the image
    # (== conv2's H zero padding). Interior tiles pay just two tiny selects.
    zrow = jnp.zeros((1, W, wd), jnp.bfloat16)
    top = jnp.where(t == 0, zrow, h1[0:1])
    bot = jnp.where(t == nt - 1, zrow, h1[TH + 1:TH + 2])
    h1 = jnp.concatenate([top, h1[1:TH + 1], bot], axis=0)

    # ---- conv2 (3x3, pad=1) as 3 matmuls with K = 3*wd ---------------------
    # kx-shifted windows built in registers (no VMEM scratch round-trip):
    #   left  -> input column x-1 (zero at x=0)
    #   right -> input column x+1 (zero at x=W-1)
    zcol = jnp.zeros((TH + 2, 1, wd), jnp.bfloat16)
    left = jnp.concatenate([zcol, h1[:, :W - 1, :]], axis=1)
    right = jnp.concatenate([h1[:, 1:, :], zcol], axis=1)
    b2d = jnp.concatenate([left, h1, right], axis=-1)          # (TH+2, W, 3*wd) bf16
    b2d = b2d.reshape((TH + 2) * W, 3 * wd)                    # reshaped ONCE

    acc = jnp.zeros((TH * W, wd), jnp.float32)
    for ky in range(3):                                        # static unroll
        # Row offsets ky*W are multiples of 8 (W % 8 == 0) -> aligned slices.
        acc = acc + jnp.dot(b2d[ky * W:ky * W + TH * W, :], w2_ref[ky],
                            preferred_element_type=jnp.float32)
    h2 = jnp.maximum(acc + b2_ref[...], 0.0).astype(jnp.bfloat16)

    # ---- conv3 (1x1, BN scale folded) + bias -------------------------------
    h3 = jnp.dot(h2, w3_ref[...], preferred_element_type=jnp.float32)
    h3 = h3 + b3_ref[...]

    # ---- residual add + relu (f32 math; Cin == Cout) -----------------------
    idn = x_ref[pl.ds(r0 + 1, TH), :, :].astype(jnp.float32)
    out = jnp.maximum(h3 + idn.reshape(TH * W, Cout), 0.0)
    o_ref[...] = out.reshape(TH, W, Cout).astype(o_ref.dtype)


def bottleneck_pallas(x_nhwc, prepared, tile_h=None, out_dtype=jnp.bfloat16):
    """x_nhwc: (N, H, W, Cin) float32. Returns (N, H, W, Cout) in out_dtype."""
    w1, b1, w2, b2, w3, b3 = prepared
    N, H, W, Cin = x_nhwc.shape
    wd = w1.shape[1]
    Cout = w3.shape[1]
    assert Cin == Cout, "no-downsample Bottleneck needs inplanes == planes*4"
    if tile_h is None:
        tile_h = H                    # big tiles: max matmul M, no halo recompute
    assert H % tile_h == 0, "H must be divisible by tile_h"
    assert W % 8 == 0, "W must be a multiple of 8 (sublane alignment)"
    TH = tile_h

    # bf16 matmul operands; one zero H-halo row on each side so every tile can
    # read a (TH+2)-row window without branching on the image border.
    x_pad = jnp.pad(x_nhwc.astype(jnp.bfloat16),
                    ((0, 0), (1, 1), (0, 0), (0, 0)))

    grid_spec = pltpu.PrefetchScalarGridSpec(
        num_scalar_prefetch=0,
        grid=(N, H // TH),
        in_specs=[
            # whole padded image per batch element; index constant across the
            # H-tile axis, so it is DMA'd only once per n
            pl.BlockSpec((None, H + 2, W, Cin), lambda n, t: (n, 0, 0, 0)),
            pl.BlockSpec((Cin, wd), lambda n, t: (0, 0)),            # w1*s1
            pl.BlockSpec((1, wd), lambda n, t: (0, 0)),              # b1
            pl.BlockSpec((3, 3 * wd, wd), lambda n, t: (0, 0, 0)),   # w2*s2
            pl.BlockSpec((1, wd), lambda n, t: (0, 0)),              # b2
            pl.BlockSpec((wd, Cout), lambda n, t: (0, 0)),           # w3*s3
            pl.BlockSpec((1, Cout), lambda n, t: (0, 0)),            # b3
        ],
        out_specs=pl.BlockSpec((None, TH, W, Cout), lambda n, t: (n, t, 0, 0)),
    )

    return pl.pallas_call(
        bottleneck_kernel,
        out_shape=jax.ShapeDtypeStruct((N, H, W, Cout), out_dtype),
        grid_spec=grid_spec,
        compiler_params=pltpu.CompilerParams(
            # n is parallel (v7x cores shard on batch -> one image DMA per core);
            # the H-tile axis is just a loop.
            dimension_semantics=("parallel", "arbitrary"),
            vmem_limit_bytes=32 * 1024 * 1024),
    )(x_pad, w1, b1, w2, b2, w3, b3)


# -------------------------- parameter preparation ---------------------------

def make_raw_params(key, inplanes, planes, base_width=64, groups=1):
    """PyTorch-layout raw params: OIHW conv weights + BatchNorm stats."""
    expansion = 4
    width = int(planes * (base_width / 64.0)) * groups
    cout = planes * expansion
    ks = jax.random.split(key, 15)

    def bn(i, c):
        gamma = 0.5 + 0.1 * jax.random.normal(ks[i], (c,), jnp.float32)
        beta = 0.1 * jax.random.normal(ks[i + 1], (c,), jnp.float32)
        mean = 0.1 * jax.random.normal(ks[i + 2], (c,), jnp.float32)
        var = jnp.abs(jax.random.normal(ks[i + 3], (c,), jnp.float32)) + 0.5
        return gamma, beta, mean, var

    w1 = 0.1 * jax.random.normal(ks[0], (width, inplanes, 1, 1), jnp.float32)
    w2 = 0.1 * jax.random.normal(ks[1], (width, width, 3, 3), jnp.float32)
    w3 = 0.1 * jax.random.normal(ks[2], (cout, width, 1, 1), jnp.float32)
    return dict(w1=w1, w2=w2, w3=w3, bn1=bn(3, width), bn2=bn(7, width),
                bn3=bn(11, cout))


def prepare_params(raw, eps=1e-5):
    """Fold eval-mode BN into conv weights (scale) and biases; cast to bf16."""
    def fold(bn):
        gamma, beta, mean, var = bn
        scale = gamma / jnp.sqrt(var + eps)
        return scale, beta - mean * scale

    s1, b1 = fold(raw["bn1"])
    s2, b2 = fold(raw["bn2"])
    s3, b3 = fold(raw["bn3"])

    # conv1: OIHW (wd, Cin, 1, 1) -> (Cin, wd), BN scale folded per out column
    w1 = jnp.transpose(raw["w1"][:, :, 0, 0], (1, 0)) * s1[None, :]
    # conv2: OIHW (wd, wd, 3, 3) -> HWIO (3, 3, wd, wd) -> (3, 3*wd, wd)
    w2 = jnp.transpose(raw["w2"], (2, 3, 1, 0)) * s2[None, None, None, :]
    wd = w2.shape[2]
    w2 = w2.reshape(3, 3 * wd, w2.shape[3])
    # conv3: OIHW (Cout, wd, 1, 1) -> (wd, Cout)
    w3 = jnp.transpose(raw["w3"][:, :, 0, 0], (1, 0)) * s3[None, :]

    return (w1.astype(jnp.bfloat16), b1.reshape(1, -1).astype(jnp.float32),
            w2.astype(jnp.bfloat16), b2.reshape(1, -1).astype(jnp.float32),
            w3.astype(jnp.bfloat16), b3.reshape(1, -1).astype(jnp.float32))


def bottleneck_ref(x_nhwc, prepared):
    """Plain-JAX reference with the same folded weights and bf16 rounding of
    the matmul operands (accumulation in f32), used only for verification."""
    w1, b1, w2k, b2, w3, b3 = prepared
    cin, wd = w1.shape
    cout = w3.shape[1]
    f32 = jnp.float32

    def bf(a):  # same bf16 rounding the kernel applies to matmul operands
        return a.astype(jnp.bfloat16).astype(f32)

    dn = ("NHWC", "HWIO", "NHWC")
    xf = bf(x_nhwc)
    w1f = w1.astype(f32).reshape(1, 1, cin, wd)
    w2f = w2k.astype(f32).reshape(3, 3, wd, wd)
    w3f = w3.astype(f32).reshape(1, 1, wd, cout)

    h = lax.conv_general_dilated(xf, w1f, (1, 1), "VALID", dimension_numbers=dn)
    h = jnp.maximum(h + b1, 0.0)
    h = lax.conv_general_dilated(bf(h), w2f, (1, 1), ((1, 1), (1, 1)),
                                 dimension_numbers=dn)
    h = jnp.maximum(h + b2, 0.0)
    h = lax.conv_general_dilated(bf(h), w3f, (1, 1), "VALID",
                                 dimension_numbers=dn)
    h = h + b3
    return jnp.maximum(h + xf, 0.0)


if __name__ == "__main__":
    key = jax.random.PRNGKey(0)
    k_x, k_p = jax.random.split(key)

    # Real ResNet-50 stage-1 bottleneck widths (lane-dense channels),
    # small spatial extent.
    N, H, W = 2, 16, 16
    planes = 64
    inplanes = planes * 4            # 256 -> downsample is None, Cin == Cout

    # PyTorch-style NCHW input, transposed to the kernel's NHWC layout.
    x_nchw = jax.random.normal(k_x, (N, inplanes, H, W), jnp.float32)
    x_nhwc = jnp.transpose(x_nchw, (0, 2, 3, 1))

    raw = make_raw_params(k_p, inplanes, planes)
    prepared = prepare_params(raw)

    # tile_h=None -> whole-image H tiles (TH=H): max matmul M, no halo waste.
    out = bottleneck_pallas(x_nhwc, prepared, tile_h=None,
                            out_dtype=jnp.bfloat16)
    out = jax.block_until_ready(out)

    ref = bottleneck_ref(x_nhwc, prepared)
    assert out.shape == (N, H, W, inplanes)
    out_f32 = out.astype(jnp.float32)
    max_err = float(jnp.max(jnp.abs(out_f32 - ref)))
    # Output is bf16 (one extra rounding vs. the f32 reference).
    assert jnp.allclose(out_f32, ref, rtol=2e-2, atol=2e-2), \
        f"mismatch vs reference (max abs err {max_err})"

    print("KERNEL_OK")
</pallas_src>

<mosaic_0001>
module attributes {stable_mosaic.version = 11 : i64} {
  func.func @bottleneck_kernel(%arg0: i32, %arg1: i32, %arg2: memref<1x18x16x256xbf16, #tpu.memory_space<vmem>>, %arg3: memref<256x64xbf16, #tpu.memory_space<vmem>>, %arg4: memref<1x64xf32, #tpu.memory_space<vmem>>, %arg5: memref<3x192x64xbf16, #tpu.memory_space<vmem>>, %arg6: memref<1x64xf32, #tpu.memory_space<vmem>>, %arg7: memref<64x256xbf16, #tpu.memory_space<vmem>>, %arg8: memref<1x256xf32, #tpu.memory_space<vmem>>, %arg9: memref<1x16x16x256xbf16, #tpu.memory_space<vmem>>) attributes {dimension_semantics = [#tpu.dimension_semantics<parallel>, #tpu.dimension_semantics<arbitrary>], iteration_bounds = array<i64: 2, 1>, scalar_prefetch = 0 : i64, scratch_operands = 0 : i64, tpu.core_type = #tpu.core_type<tc>, window_params = [{transform_indices = @transform_0, window_bounds = array<i64: 1, 18, 16, 256>}, {pipeline_mode = #tpu.pipeline_mode<synchronous>, transform_indices = @transform_1, window_bounds = array<i64: 256, 64>}, {pipeline_mode = #tpu.pipeline_mode<synchronous>, transform_indices = @transform_2, window_bounds = array<i64: 1, 64>}, {pipeline_mode = #tpu.pipeline_mode<synchronous>, transform_indices = @transform_3, window_bounds = array<i64: 3, 192, 64>}, {pipeline_mode = #tpu.pipeline_mode<synchronous>, transform_indices = @transform_4, window_bounds = array<i64: 1, 64>}, {pipeline_mode = #tpu.pipeline_mode<synchronous>, transform_indices = @transform_5, window_bounds = array<i64: 64, 256>}, {pipeline_mode = #tpu.pipeline_mode<synchronous>, transform_indices = @transform_6, window_bounds = array<i64: 1, 256>}, {transform_indices = @transform_7, window_bounds = array<i64: 1, 16, 16, 256>}]} {
    %c16_i32 = arith.constant 16 : i32
    %0 = arith.muli %arg1, %c16_i32 : i32
    %1 = tpu.assume_multiple %0, 16 : i32
    %c0 = arith.constant 0 : index
    %2 = arith.index_cast %1 : i32 to index
    %c0_0 = arith.constant 0 : index
    %c0_1 = arith.constant 0 : index
    %3 = vector.load %arg2[%c0, %2, %c0_0, %c0_1] : memref<1x18x16x256xbf16, #tpu.memory_space<vmem>>, vector<1x18x16x256xbf16>
    %4 = vector.shape_cast %3 : vector<1x18x16x256xbf16> to vector<18x16x256xbf16>
    %5 = vector.shape_cast %4 : vector<18x16x256xbf16> to vector<288x256xbf16>
    %c0_2 = arith.constant 0 : index
    %c0_3 = arith.constant 0 : index
    %6 = vector.load %arg3[%c0_2, %c0_3] : memref<256x64xbf16, #tpu.memory_space<vmem>>, vector<256x64xbf16>
    %cst = arith.constant dense<0.000000e+00> : vector<288x64xf32>
    %7 = tpu.matmul %5, %6, %cst {dimension_numbers = #tpu.dot_dimension_numbers<[1], [0], [0], [1], [0, 0, 1, 1], [], []>} : vector<288x256xbf16>, vector<256x64xbf16>, vector<288x64xf32> -> vector<288x64xf32>
    %c0_4 = arith.constant 0 : index
    %c0_5 = arith.constant 0 : index
    %8 = vector.load %arg4[%c0_4, %c0_5] : memref<1x64xf32, #tpu.memory_space<vmem>>, vector<1x64xf32>
    %9 = vector.broadcast %8 : vector<1x64xf32> to vector<288x64xf32>
    %10 = arith.addf %7, %9 : vector<288x64xf32>
    %cst_6 = arith.constant 0.000000e+00 : f32
    %11 = vector.broadcast %cst_6 : f32 to vector<288x64xf32>
    %12 = arith.maximumf %10, %11 : vector<288x64xf32>
    %13 = arith.truncf %12 : vector<288x64xf32> to vector<288x64xbf16>
    %14 = vector.shape_cast %13 : vector<288x64xbf16> to vector<18x16x64xbf16>
    %cst_7 = arith.constant 0.000000e+00 : bf16
    %15 = vector.broadcast %cst_7 : bf16 to vector<1x16x64xbf16>
    %c0_i32 = arith.constant 0 : i32
    %16 = arith.cmpi eq, %arg1, %c0_i32 : i32
    %17 = vector.extract_strided_slice %14 {offsets = [0, 0, 0], sizes = [1, 16, 64], strides = [1, 1, 1]} : vector<18x16x64xbf16> to vector<1x16x64xbf16>
    %18 = arith.select %16, %15, %17 : vector<1x16x64xbf16>
    %c0_i32_8 = arith.constant 0 : i32
    %19 = arith.cmpi eq, %arg1, %c0_i32_8 : i32
    %20 = vector.extract_strided_slice %14 {offsets = [17, 0, 0], sizes = [1, 16, 64], strides = [1, 1, 1]} : vector<18x16x64xbf16> to vector<1x16x64xbf16>
    %21 = arith.select %19, %15, %20 : vector<1x16x64xbf16>
    %22 = vector.extract_strided_slice %14 {offsets = [1, 0, 0], sizes = [16, 16, 64], strides = [1, 1, 1]} : vector<18x16x64xbf16> to vector<16x16x64xbf16>
    %23 = tpu.concatenate %18, %22, %21 in 0 : vector<1x16x64xbf16>, vector<16x16x64xbf16>, vector<1x16x64xbf16> -> vector<18x16x64xbf16>
    %cst_9 = arith.constant 0.000000e+00 : bf16
    %24 = vector.broadcast %cst_9 : bf16 to vector<18x1x64xbf16>
    %25 = vector.extract_strided_slice %23 {offsets = [0, 0, 0], sizes = [18, 15, 64], strides = [1, 1, 1]} : vector<18x16x64xbf16> to vector<18x15x64xbf16>
    %26 = tpu.concatenate %24, %25 in 1 : vector<18x1x64xbf16>, vector<18x15x64xbf16> -> vector<18x16x64xbf16>
    %27 = vector.extract_strided_slice %23 {offsets = [0, 1, 0], sizes = [18, 15, 64], strides = [1, 1, 1]} : vector<18x16x64xbf16> to vector<18x15x64xbf16>
    %28 = tpu.concatenate %27, %24 in 1 : vector<18x15x64xbf16>, vector<18x1x64xbf16> -> vector<18x16x64xbf16>
    %29 = tpu.concatenate %26, %23, %28 in 2 : vector<18x16x64xbf16>, vector<18x16x64xbf16>, vector<18x16x64xbf16> -> vector<18x16x192xbf16>
    %30 = vector.shape_cast %29 : vector<18x16x192xbf16> to vector<288x192xbf16>
    %cst_10 = arith.constant 0.000000e+00 : f32
    %31 = vector.broadcast %cst_10 : f32 to vector<256x64xf32>
    %32 = vector.extract_strided_slice %30 {offsets = [0, 0], sizes = [256, 192], strides = [1, 1]} : vector<288x192xbf16> to vector<256x192xbf16>
    %c0_11 = arith.constant 0 : index
    %c0_12 = arith.constant 0 : index
    %c0_13 = arith.constant 0 : index
    %33 = vector.load %arg5[%c0_11, %c0_12, %c0_13] : memref<3x192x64xbf16, #tpu.memory_space<vmem>>, vector<1x192x64xbf16>
    %34 = vector.shape_cast %33 : vector<1x192x64xbf16> to vector<192x64xbf16>
    %cst_14 = arith.constant dense<0.000000e+00> : vector<256x64xf32>
    %35 = tpu.matmul %32, %34, %cst_14 {dimension_numbers = #tpu.dot_dimension_numbers<[1], [0], [0], [1], [0, 0, 1, 1], [], []>} : vector<256x192xbf16>, vector<192x64xbf16>, vector<256x64xf32> -> vector<256x64xf32>
    %36 = arith.addf %31, %35 : vector<256x64xf32>
    %37 = vector.extract_strided_slice %30 {offsets = [16, 0], sizes = [256, 192], strides = [1, 1]} : vector<288x192xbf16> to vector<256x192xbf16>
    %c1 = arith.constant 1 : index
    %c0_15 = arith.constant 0 : index
    %c0_16 = arith.constant 0 : index
    %38 = vector.load %arg5[%c1, %c0_15, %c0_16] : memref<3x192x64xbf16, #tpu.memory_space<vmem>>, vector<1x192x64xbf16>
    %39 = vector.shape_cast %38 : vector<1x192x64xbf16> to vector<192x64xbf16>
    %cst_17 = arith.constant dense<0.000000e+00> : vector<256x64xf32>
    %40 = tpu.matmul %37, %39, %cst_17 {dimension_numbers = #tpu.dot_dimension_numbers<[1], [0], [0], [1], [0, 0, 1, 1], [], []>} : vector<256x192xbf16>, vector<192x64xbf16>, vector<256x64xf32> -> vector<256x64xf32>
    %41 = arith.addf %36, %40 : vector<256x64xf32>
    %42 = vector.extract_strided_slice %30 {offsets = [32, 0], sizes = [256, 192], strides = [1, 1]} : vector<288x192xbf16> to vector<256x192xbf16>
    %c2 = arith.constant 2 : index
    %c0_18 = arith.constant 0 : index
    %c0_19 = arith.constant 0 : index
    %43 = vector.load %arg5[%c2, %c0_18, %c0_19] : memref<3x192x64xbf16, #tpu.memory_space<vmem>>, vector<1x192x64xbf16>
    %44 = vector.shape_cast %43 : vector<1x192x64xbf16> to vector<192x64xbf16>
    %cst_20 = arith.constant dense<0.000000e+00> : vector<256x64xf32>
    %45 = tpu.matmul %42, %44, %cst_20 {dimension_numbers = #tpu.dot_dimension_numbers<[1], [0], [0], [1], [0, 0, 1, 1], [], []>} : vector<256x192xbf16>, vector<192x64xbf16>, vector<256x64xf32> -> vector<256x64xf32>
    %46 = arith.addf %41, %45 : vector<256x64xf32>
    %c0_21 = arith.constant 0 : index
    %c0_22 = arith.constant 0 : index
    %47 = vector.load %arg6[%c0_21, %c0_22] : memref<1x64xf32, #tpu.memory_space<vmem>>, vector<1x64xf32>
    %48 = vector.broadcast %47 : vector<1x64xf32> to vector<256x64xf32>
    %49 = arith.addf %46, %48 : vector<256x64xf32>
    %cst_23 = arith.constant 0.000000e+00 : f32
    %50 = vector.broadcast %cst_23 : f32 to vector<256x64xf32>
    %51 = arith.maximumf %49, %50 : vector<256x64xf32>
    %52 = arith.truncf %51 : vector<256x64xf32> to vector<256x64xbf16>
    %c0_24 = arith.constant 0 : index
    %c0_25 = arith.constant 0 : index
    %53 = vector.load %arg7[%c0_24, %c0_25] : memref<64x256xbf16, #tpu.memory_space<vmem>>, vector<64x256xbf16>
    %cst_26 = arith.constant dense<0.000000e+00> : vector<256x256xf32>
    %54 = tpu.matmul %52, %53, %cst_26 {dimension_numbers = #tpu.dot_dimension_numbers<[1], [0], [0], [1], [0, 0, 1, 1], [], []>} : vector<256x64xbf16>, vector<64x256xbf16>, vector<256x256xf32> -> vector<256x256xf32>
    %c0_27 = arith.constant 0 : index
    %c0_28 = arith.constant 0 : index
    %55 = vector.load %arg8[%c0_27, %c0_28] : memref<1x256xf32, #tpu.memory_space<vmem>>, vector<1x256xf32>
    %56 = vector.broadcast %55 : vector<1x256xf32> to vector<256x256xf32>
    %57 = arith.addf %54, %56 : vector<256x256xf32>
    %c1_i32 = arith.constant 1 : i32
    %58 = arith.addi %1, %c1_i32 : i32
    %c0_29 = arith.constant 0 : index
    %59 = arith.index_cast %58 : i32 to index
    %c0_30 = arith.constant 0 : index
    %c0_31 = arith.constant 0 : index
    %60 = vector.load %arg2[%c0_29, %59, %c0_30, %c0_31] : memref<1x18x16x256xbf16, #tpu.memory_space<vmem>>, vector<1x16x16x256xbf16>
    %61 = vector.shape_cast %60 : vector<1x16x16x256xbf16> to vector<16x16x256xbf16>
    %62 = arith.extf %61 : vector<16x16x256xbf16> to vector<16x16x256xf32>
    %63 = vector.shape_cast %62 : vector<16x16x256xf32> to vector<256x256xf32>
    %64 = arith.addf %57, %63 : vector<256x256xf32>
    %cst_32 = arith.constant 0.000000e+00 : f32
    %65 = vector.broadcast %cst_32 : f32 to vector<256x256xf32>
    %66 = arith.maximumf %64, %65 : vector<256x256xf32>
    %67 = vector.shape_cast %66 : vector<256x256xf32> to vector<16x16x256xf32>
    %68 = arith.truncf %67 : vector<16x16x256xf32> to vector<16x16x256xbf16>
    %c0_33 = arith.constant 0 : index
    %c0_34 = arith.constant 0 : index
    %c0_35 = arith.constant 0 : index
    %c0_36 = arith.constant 0 : index
    %69 = vector.load %arg9[%c0_33, %c0_34, %c0_35, %c0_36] : memref<1x16x16x256xbf16, #tpu.memory_space<vmem>>, vector<1x16x16x256xbf16>
    %70 = vector.shape_cast %69 : vector<1x16x16x256xbf16> to vector<16x16x256xbf16>
    %71 = vector.shape_cast %68 : vector<16x16x256xbf16> to vector<1x16x16x256xbf16>
    tpu.vector_store %arg9[%c0_33, %c0_34, %c0_35, %c0_36], %71 {strides = array<i32>} : memref<1x16x16x256xbf16, #tpu.memory_space<vmem>>, vector<1x16x16x256xbf16>,
    return
  }
  func.func @transform_0(%arg0: i32, %arg1: i32) -> (i32, i32, i32, i32) {
    %c0_i32 = arith.constant 0 : i32
    %c0_i32_0 = arith.constant 0 : i32
    %c0_i32_1 = arith.constant 0 : i32
    %c0_i32_2 = arith.constant 0 : i32
    return %arg0, %c0_i32, %c0_i32_0, %c0_i32_1 : i32, i32, i32, i32
  }
  func.func @transform_1(%arg0: i32, %arg1: i32) -> (i32, i32) {
    %c0_i32 = arith.constant 0 : i32
    %c0_i32_0 = arith.constant 0 : i32
    %c0_i32_1 = arith.constant 0 : i32
    return %c0_i32, %c0_i32_0 : i32, i32
  }
  func.func @transform_2(%arg0: i32, %arg1: i32) -> (i32, i32) {
    %c0_i32 = arith.constant 0 : i32
    %c0_i32_0 = arith.constant 0 : i32
    %c0_i32_1 = arith.constant 0 : i32
    return %c0_i32, %c0_i32_0 : i32, i32
  }
  func.func @transform_3(%arg0: i32, %arg1: i32) -> (i32, i32, i32) {
    %c0_i32 = arith.constant 0 : i32
    %c0_i32_0 = arith.constant 0 : i32
    %c0_i32_1 = arith.constant 0 : i32
    %c0_i32_2 = arith.constant 0 : i32
    return %c0_i32, %c0_i32_0, %c0_i32_1 : i32, i32, i32
  }
  func.func @transform_4(%arg0: i32, %arg1: i32) -> (i32, i32) {
    %c0_i32 = arith.constant 0 : i32
    %c0_i32_0 = arith.constant 0 : i32
    %c0_i32_1 = arith.constant 0 : i32
    return %c0_i32, %c0_i32_0 : i32, i32
  }
  func.func @transform_5(%arg0: i32, %arg1: i32) -> (i32, i32) {
    %c0_i32 = arith.constant 0 : i32
    %c0_i32_0 = arith.constant 0 : i32
    %c0_i32_1 = arith.constant 0 : i32
    return %c0_i32, %c0_i32_0 : i32, i32
  }
  func.func @transform_6(%arg0: i32, %arg1: i32) -> (i32, i32) {
    %c0_i32 = arith.constant 0 : i32
    %c0_i32_0 = arith.constant 0 : i32
    %c0_i32_1 = arith.constant 0 : i32
    return %c0_i32, %c0_i32_0 : i32, i32
  }
  func.func @transform_7(%arg0: i32, %arg1: i32) -> (i32, i32, i32, i32) {
    %c0_i32 = arith.constant 0 : i32
    %c0_i32_0 = arith.constant 0 : i32
    %c0_i32_1 = arith.constant 0 : i32
    return %arg0, %arg1, %c0_i32, %c0_i32_0 : i32, i32, i32, i32
  }
}

</mosaic_0001>

<bundles_post_ra>
// kernel: tpu_custom_call.1
= control target key start
LH: loop header
LB: loop body
LE: loop exit
PB: predicated region body
PF: predicated region fallthrough
CT: control target
= control target key end

     0   :  { %12 = vsyncpa [#allocation3], 0  ;;  %s4855_s0 = inlined_call_operand.vmem [shape: bf16[2,18,16,256], index: 0, kind: input, shape index: {}]   ;;  %s4856_s1 = inlined_call_operand.vmem [shape: bf16[256,64], index: 1, kind: input, shape index: {}]   ;;  %s4857_s2 = inlined_call_operand.vmem [shape: f32[1,64], index: 2, kind: input, shape index: {}]   ;;  %s4858_s3 = inlined_call_operand.vmem [shape: bf16[3,192,64], index: 3, kind: input, shape index: {}]   ;;  %s4859_s4 = inlined_call_operand.vmem [shape: f32[1,64], index: 4, kind: input, shape index: {}]   ;;  %s4860_s5 = inlined_call_operand.vmem [shape: bf16[64,256], index: 5, kind: input, shape index: {}]   ;;  %s4861_s6 = inlined_call_operand.vmem [shape: f32[1,256], index: 6, kind: input, shape index: {}]   ;;  %s4862_s7 = inlined_call_operand.hbm [shape: bf16[2,16,16,256], index: 7, kind: output, shape index: {}]  }
   0x1   :  { %14 = vsyncpa [#allocation3 + $0x1], 0  ;;  %s3691_s24 = smov 0   ;;  %s3693_s25 = smov 0  }
   0x2   :  { %s3695_s26 = smov 0   ;;  %s3697_s27 = smov 0  }
   0x3   :  { %s3699_s28 = smov 0   ;;  %s3701_s29 = smov 0  }
   0x4 LB: > { %s3047_s30 = sadd.s32 4294967295, %s3644_s29   ;;  %s3048_s8 = sadd.s32 4294967294, %s3644_s29   ;;  %s3644_s29 = sphi %s3701_s29, %s20_s29   ;;  %s3640_s28 = sphi %s3699_s28, %s4873_s28   ;;  %s3636_s27 = sphi %s3697_s27, %s4872_s27   ;;  %s3632_s26 = sphi %s3695_s26, %s4871_s26   ;;  %s3628_s25 = sphi %s3693_s25, %s4870_s25   ;;  %s3624_s24 = sphi %s3691_s24, %s4869_s24  }
   0x5   : > { %s32_s9 = sadd.s32 1, %s3640_s28  ;;  %s193_s10 = sadd.s32 1, %s3632_s26 }
   0x6   : > { %p34_p0 = scmp.ge.s32.totalorder %s32_s9, 2  ;;  %p203_p1 = scmp.ne.s32.totalorder %s3632_s26, %s3628_s25 }
   0x7   : > { %p204_p2 = scmp.eq.s32.totalorder %s3047_s30, 1  ;;  %p209_p3 = scmp.ne.s32.totalorder %s3628_s25, %s3624_s24 }
   0x8   : > { %s4875_s9 = smov (%p34_p0, %s32_s9), 0  ;;  %p210_p5 = scmp.eq.s32.totalorder %s3048_s8, 1 }
   0x9   : > { %p3731_p4 = por %p204_p2, %p203_p1  ;;  %s188_s12 = ssub.s32 %s3640_s28, %s4875_s9 }
   0xa   : > { %p3051_p6 = scmp.ge.s32.totalorder %s3644_s29, 1  ;;  %p191_p7 = scmp.eq.s32.totalorder %s188_s12, 0 }
   0xb   : > { %p3738_p8 = por %p210_p5, %p209_p3  ;;  %p254_p9 = scmp.lt.s32.totalorder %s3644_s29, 3 }
   0xc   : > { %s3744_s14 = scalar_select %p191_p7, %s3632_s26, %s193_s10  }
   0xd   : > { %p255_p10 = pnand %p3051_p6, %p254_p9 }
   0xe   : > { %p286_p11 = scmp.lt.s32.totalorder (!%p255_p10), %s3636_s27, 1  ;;  %s3647_s17 = smov (!%p255_p10), 64  }
   0xf   : > { %258 = sbr.rel (%p255_p10) target bundleno = 1088 (0x440), region = 48  ;;  %s283_s10 = sand.u32 (!%p255_p10), 1, %s3628_s25  }
  0x10   : > { %s3052_s12 = sshll.u32 (!%p255_p10), %s283_s10, 8  ;;  %s3648_s22 = smov (!%p255_p10), [#allocation2]  }
  0x11   : > { %s4678_s15 = scalar_lea.vmem (!%p255_p10), [#allocation2], %s3052_s12  ;;  %s3572_s23 = sshll.u32 (!%p255_p10), %s3648_s22, 4  ;;  %s3573_s23 = int_to_ptr.vmem [resolvable:$false] %s3572_s23 }
  0x14   : > { %v3450_v0 = vld [vmem:[%s4856_s1 + $0x38] sm:$0xff]   ;;  %v3646_v1 = vmov 0   ;;  %v3451_v2 = vld [vmem:[%s4856_s1 + $0x30] sm:$0xff]   ;;  %v3452_v3 = vld [vmem:[%s4856_s1 + $0x28] sm:$0xff]   ;;  %s287_s21 = scalar_select %p286_p11, %s3636_s27, 1  ;;  %vm1104_vm0 = vcmask 1047552  }
  0x15   : > { %648 = vmatprep.subr.bf16.mxu0 %v3646_v1  ;;  %3366 = vmatprep.subr.bf16.mxu1 %v3646_v1  ;;  %v3453_v4 = vld [vmem:[%s4856_s1 + $0x20] sm:$0xff]   ;;  %v3454_v5 = vld [vmem:[%s4856_s1 + $0x18] sm:$0xff]   ;;  %v3455_v7 = vld [vmem:[%s4856_s1 + $0x10] sm:$0xff]   ;;  %vm1105_vm1 = vsmask.f32 7424  ;;  %vm1179_vm3 = vcmask 523264  }
  0x16   : > { %649 = vmatpush1.bf16.msra.mxu0 %v3450_v0  ;;  %s3390_s30 = smul.u32 288, %s287_s21  ;;  %v3456_v8 = vld [vmem:[%s4856_s1 + $0x8] sm:$0xff]   ;;  %v3457_v9 = vld [vmem:[%s4856_s1] sm:$0xff]   ;;  %v3458_v10 = vld [vmem:[%s4856_s1 + $0x78] sm:$0xff]   ;;  %vm1029_vm4 = vcmask 1040384   ;;  %s4810_s21 = scalar_lea.sflag [#allocation3], %s283_s10 }
  0x17   : > { %650 = vmatprep.subr.bf16.mxu0 %v3646_v1  ;;  %v3459_v11 = vld [vmem:[%s4856_s1 + $0x70] sm:$0xff]   ;;  %v3460_v12 = vld [vmem:[%s4856_s1 + $0x68] sm:$0xff]   ;;  %v3461_v13 = vld [vmem:[%s4856_s1 + $0x60] sm:$0xff]   ;;  %vm1030_vm5 = vsmask.f32 256 }
  0x18   : > { %s3771_s16 = scalar_lea.vmem %s4855_s0, %s3390_s30  ;;  %v3462_v14 = vld [vmem:[%s4856_s1 + $0x58] sm:$0xff]   ;;  %v3463_v15 = vld [vmem:[%s4856_s1 + $0x50] sm:$0xff]   ;;  %v3464_v16 = vld [vmem:[%s4856_s1 + $0x48] sm:$0xff]   ;;  %s3574_s30 = scalar_lea.vmem %s3573_s23, 8192 }
  0x19   : > { %v3468_v6 = vld [vmem:[%s3771_s16 + $0x4] ss:$8 sps:$4 sm:$0xff]   ;;  %v3466_v18 = vld [vmem:[%s3771_s16] ss:$8 sps:$4 sm:$0xff]   ;;  %v3469_v19 = vld [vmem:[%s3771_s16 + $0x14] ss:$8 sps:$4 sm:$0xff]  }
  0x1a   : > { %651 = vmatpush1.bf16.msra.mxu0 %v3451_v2  ;;  %680 = vmatprep.mubr.bf16.mxu0 %v3468_v6  ;;  %v3465_v17 = vld [vmem:[%s4856_s1 + $0x40] sm:$0xff]   ;;  %v3471_v20 = vld [vmem:[%s3771_s16 + $0x10] ss:$8 sps:$4 sm:$0xff]   ;;  %v3475_v23 = vld [vmem:[%s3771_s16 + $0x34] ss:$8 sps:$4 sm:$0xff]  }
  0x1b   : > { %652 = vmatprep.subr.bf16.mxu0 %v3646_v1  ;;  %v3472_v21 = vld [vmem:[%s3771_s16 + $0x24] ss:$8 sps:$4 sm:$0xff]   ;;  %v3474_v22 = vld [vmem:[%s3771_s16 + $0x20] ss:$8 sps:$4 sm:$0xff]   ;;  %v3477_v24 = vld [vmem:[%s3771_s16 + $0x30] ss:$8 sps:$4 sm:$0xff]  }
  0x1c   : > { %v3478_v25 = vld [vmem:[%s3771_s16 + $0x44] ss:$8 sps:$4 sm:$0xff]   ;;  %v3480_v26 = vld [vmem:[%s3771_s16 + $0x40] ss:$8 sps:$4 sm:$0xff]   ;;  %v3481_v27 = vld [vmem:[%s3771_s16 + $0x54] ss:$8 sps:$4 sm:$0xff]  }
  0x1d   : > { %v3483_v28 = vld [vmem:[%s3771_s16 + $0x50] ss:$8 sps:$4 sm:$0xff]   ;;  %v3484_v29 = vld [vmem:[%s3771_s16 + $0x64] ss:$8 sps:$4 sm:$0xff]   ;;  %v3486_v30 = vld [vmem:[%s3771_s16 + $0x60] ss:$8 sps:$4 sm:$0xff]  }
  0x1e   : > { %653 = vmatpush1.bf16.msra.mxu0 %v3452_v3  ;;  %v3487_v31 = vld [vmem:[%s3771_s16 + $0x74] ss:$8 sps:$4 sm:$0xff]   ;;  %v3489_v32 = vld [vmem:[%s3771_s16 + $0x70] ss:$8 sps:$4 sm:$0xff]   ;;  %v3490_v33 = vld [vmem:[%s3771_s16 + $0x84] ss:$8 sps:$4 sm:$0xff]  }
  0x1f   : > { %654 = vmatprep.subr.bf16.mxu0 %v3646_v1  ;;  %v3492_v34 = vld [vmem:[%s3771_s16 + $0x80] ss:$8 sps:$4 sm:$0xff]   ;;  %v3493_v35 = vld [vmem:[%s3771_s16 + $0x94] ss:$8 sps:$4 sm:$0xff]   ;;  %v3495_v36 = vld [vmem:[%s3771_s16 + $0x90] ss:$8 sps:$4 sm:$0xff]  }
  0x20   : > { %v3496_v37 = vld [vmem:[%s3771_s16 + $0xa4] ss:$8 sps:$4 sm:$0xff]   ;;  %v3498_v38 = vld [vmem:[%s3771_s16 + $0xa0] ss:$8 sps:$4 sm:$0xff]   ;;  %v3499_v39 = vld [vmem:[%s3771_s16 + $0xb4] ss:$8 sps:$4 sm:$0xff]  }
  0x21   : > { %v3501_v40 = vld [vmem:[%s3771_s16 + $0xb0] ss:$8 sps:$4 sm:$0xff]   ;;  %v3502_v41 = vld [vmem:[%s3771_s16 + $0xc4] ss:$8 sps:$4 sm:$0xff]   ;;  %v3504_v42 = vld [vmem:[%s3771_s16 + $0xc0] ss:$8 sps:$4 sm:$0xff]  }
  0x22   : > { %655 = vmatpush1.bf16.msra.mxu0 %v3453_v4  ;;  %v3505_v43 = vld [vmem:[%s3771_s16 + $0xd4] ss:$8 sps:$4 sm:$0xff]   ;;  %v3507_v44 = vld [vmem:[%s3771_s16 + $0xd0] ss:$8 sps:$4 sm:$0xff]   ;;  %v3508_v45 = vld [vmem:[%s3771_s16 + $0xe4] ss:$8 sps:$4 sm:$0xff]  }
  0x23   : > { %656 = vmatprep.subr.bf16.mxu0 %v3646_v1  ;;  %v3510_v46 = vld [vmem:[%s3771_s16 + $0xe0] ss:$8 sps:$4 sm:$0xff]   ;;  %v3511_v47 = vld [vmem:[%s3771_s16 + $0xf4] ss:$8 sps:$4 sm:$0xff]   ;;  %v3513_v48 = vld [vmem:[%s3771_s16 + $0xf0] ss:$8 sps:$4 sm:$0xff]  }
  0x24   : > { %v3514_v49 = vld [vmem:[%s3771_s16 + $0x104] ss:$8 sps:$4 sm:$0xff]   ;;  %v3516_v50 = vld [vmem:[%s3771_s16 + $0x100] ss:$8 sps:$4 sm:$0xff]   ;;  %v3517_v51 = vld [vmem:[%s3771_s16 + $0x114] ss:$8 sps:$4 sm:$0xff]  }
  0x25   : > { %v3519_v52 = vld [vmem:[%s3771_s16 + $0x110] ss:$8 sps:$4 sm:$0xff]   ;;  %v3522_v55 = vld [vmem:[%s4858_s3 + $0x88] sm:$0xff]   ;;  %v3523_v56 = vld [vmem:[%s4858_s3 + $0x80] sm:$0xff]  }
  0x26   : > { %657 = vmatpush1.bf16.msra.mxu0 %v3454_v5  ;;  %v3520_v53 = vld [vmem:[%s4858_s3 + $0x98] sm:$0xff]   ;;  %v3521_v54 = vld [vmem:[%s4858_s3 + $0x90] sm:$0xff]   ;;  %v3883_v62 = vld [vmem:[%s4857_s2] ss:$0 sm:$0xff] }
  0x27   : > { %658 = vmatprep.subr.bf16.mxu0 %v3646_v1  ;;  %3378 = vmatpush1.bf16.msra.mxu1 %v3520_v53  ;;  %v3524_v57 = vld [vmem:[%s4858_s3 + $0x78] sm:$0xff]   ;;  %v3525_v3 = vld [vmem:[%s4858_s3 + $0x70] sm:$0xff]   ;;  %v3526_v6 = vld [vmem:[%s4858_s3 + $0x68] sm:$0xff]  }
  0x28   : > { %3367 = vmatprep.subr.bf16.mxu1 %v3646_v1  ;;  %vm3910_vm2 = vmand %vm1104_vm0, %vm1105_vm1 }
  0x29   : > { %vm4055_vm6 = vmand %vm1029_vm4, %vm1030_vm5 }
  0x2a   : > { %659 = vmatpush1.bf16.msra.mxu0 %v3455_v7 }
  0x2b   : > { %660 = vmatprep.subr.bf16.mxu0 %v3646_v1  ;;  %3379 = vmatpush1.bf16.msra.mxu1 %v3521_v54 }
  0x2c   : > { %3368 = vmatprep.subr.bf16.mxu1 %v3646_v1 }
  0x2e   : > { %661 = vmatpush1.bf16.msra.mxu0 %v3456_v8 }
  0x2f   : > { %662 = vmatprep.subr.bf16.mxu0 %v3646_v1  ;;  %3380 = vmatpush1.bf16.msra.mxu1 %v3522_v55 }
  0x30   : > { %3369 = vmatprep.subr.bf16.mxu1 %v3646_v1 }
  0x32   : > { %663 = vmatpush1.bf16.msra.mxu0 %v3457_v9 }
  0x33   : > { %664 = vmatprep.subr.bf16.mxu0 %v3646_v1  ;;  %3381 = vmatpush1.bf16.msra.mxu1 %v3523_v56 }
  0x34   : > { %3370 = vmatprep.subr.bf16.mxu1 %v3646_v1 }
  0x36   : > { %665 = vmatpush2.bf16.msra.mxu0 %v3458_v10 }
  0x37   : > { %666 = vmatprep.subr.bf16.mxu0 %v3646_v1  ;;  %3382 = vmatpush1.bf16.msra.mxu1 %v3524_v57 }
  0x38   : > { %3371 = vmatprep.subr.bf16.mxu1 %v3646_v1 }
  0x3a   : > { %667 = vmatpush2.bf16.msra.mxu0 %v3459_v11 }
  0x3b   : > { %668 = vmatprep.subr.bf16.mxu0 %v3646_v1  ;;  %3383 = vmatpush1.bf16.msra.mxu1 %v3525_v3 }
  0x3c   : > { %3372 = vmatprep.subr.bf16.mxu1 %v3646_v1 }
  0x3e   : > { %669 = vmatpush2.bf16.msra.mxu0 %v3460_v12  ;;  %v3527_v12 = vld [vmem:[%s4858_s3 + $0x60] sm:$0xff]  }
  0x3f   : > { %670 = vmatprep.subr.bf16.mxu0 %v3646_v1  ;;  %3384 = vmatpush1.bf16.msra.mxu1 %v3526_v6 }
  0x40   : > { %3373 = vmatprep.subr.bf16.mxu1 %v3646_v1 }
  0x42   : > { %671 = vmatpush2.bf16.msra.mxu0 %v3461_v13 }
  0x43   : > { %672 = vmatprep.subr.bf16.mxu0 %v3646_v1  ;;  %3385 = vmatpush1.bf16.msra.mxu1 %v3527_v12 }
  0x44   : > { %3374 = vmatprep.subr.bf16.mxu1 %v3646_v1 }
  0x46   : > { %673 = vmatpush2.bf16.msra.mxu0 %v3462_v14 }
  0x47   : > { %674 = vmatprep.subr.bf16.mxu0 %v3646_v1 }
  0x4a   : > { %675 = vmatpush2.bf16.msra.mxu0 %v3463_v15 }
  0x4b   : > { %676 = vmatprep.subr.bf16.mxu0 %v3646_v1 }
  0x4e   : > { %677 = vmatpush2.bf16.msra.mxu0 %v3464_v16 }
  0x4f   : > { %678 = vmatprep.subr.bf16.mxu0 %v3646_v1 }
  0x52   : > { %679 = vmatpush2.bf16.msra.mxu0 %v3465_v17 }
  0x53   : > { %1421 = vmatprep.subr.bf16.mxu0 %v3646_v1 }
  0x55   : > { %681 = vmatmul.mubr.bf16.vlgmr.msra.gmra.mxu0 %v3466_v18 }
  0x56   : > { %688 = vmatprep.mubr.bf16.mxu0 %v3469_v19  ;;  %1422 = vmatpush1.bf16.msra.mxu0 %v3520_v53 }
  0x57   : > { %1423 = vmatprep.subr.bf16.mxu0 %v3646_v1 }
  0x5a   : > { %1424 = vmatpush1.bf16.msra.mxu0 %v3521_v54 }
  0x5b   : > { %1425 = vmatprep.subr.bf16.mxu0 %v3646_v1 }
  0x5d   : > { %689 = vmatmul.mubr.bf16.gmra.mxu0 %v3471_v20  ;;  %v3528_v20 = vld [vmem:[%s4858_s3 + $0xb8] sm:$0xff]  }
  0x5e   : > { %696 = vmatprep.mubr.bf16.mxu0 %v3472_v21  ;;  %1426 = vmatpush1.bf16.msra.mxu0 %v3522_v55 }
  0x5f   : > { %1427 = vmatprep.subr.bf16.mxu0 %v3646_v1  ;;  %3386 = vmatpush2.bf16.msra.mxu1 %v3528_v20 }
  0x60   : > { %3375 = vmatprep.subr.bf16.mxu1 %v3646_v1 }
  0x62   : > { %1428 = vmatpush1.bf16.msra.mxu0 %v3523_v56 }
  0x63   : > { %1429 = vmatprep.subr.bf16.mxu0 %v3646_v1 }
  0x65   : > { %697 = vmatmul.mubr.bf16.gmra.mxu0 %v3474_v22 }
  0x66   : > { %704 = vmatprep.mubr.bf16.mxu0 %v3475_v23  ;;  %1430 = vmatpush1.bf16.msra.mxu0 %v3524_v57 }
  0x67   : > { %1431 = vmatprep.subr.bf16.mxu0 %v3646_v1 }
  0x6a   : > { %1432 = vmatpush1.bf16.msra.mxu0 %v3525_v3 }
  0x6b   : > { %1433 = vmatprep.subr.bf16.mxu0 %v3646_v1 }
  0x6d   : > { %705 = vmatmul.mubr.bf16.gmra.mxu0 %v3477_v24 }
  0x6e   : > { %712 = vmatprep.mubr.bf16.mxu0 %v3478_v25  ;;  %1434 = vmatpush1.bf16.msra.mxu0 %v3526_v6 }
  0x6f   : > { %1435 = vmatprep.subr.bf16.mxu0 %v3646_v1 }
  0x72   : > { %1436 = vmatpush1.bf16.msra.mxu0 %v3527_v12 }
  0x73   : > { %1445 = vmatprep.subr.bf16.mxu0 %v3646_v1 }
  0x75   : > { %713 = vmatmul.mubr.bf16.gmra.mxu0 %v3480_v26 }
  0x76   : > { %720 = vmatprep.mubr.bf16.mxu0 %v3481_v27  ;;  %1446 = vmatpush2.bf16.msra.mxu0 %v3528_v20 }
  0x77   : > { %1447 = vmatprep.subr.bf16.mxu0 %v3646_v1 }
  0x7d   : > { %721 = vmatmul.mubr.bf16.gmra.mxu0 %v3483_v28 }
  0x7e   : > { %728 = vmatprep.mubr.bf16.mxu0 %v3484_v29 }
  0x85   : > { %729 = vmatmul.mubr.bf16.gmra.mxu0 %v3486_v30 }
  0x86   : > { %736 = vmatprep.mubr.bf16.mxu0 %v3487_v31  ;;  %v3529_v31 = vld [vmem:[%s4858_s3 + $0xb0] sm:$0xff]  }
  0x87   : > { %3387 = vmatpush2.bf16.msra.mxu1 %v3529_v31  ;;  %1448 = vmatpush2.bf16.msra.mxu0 %v3529_v31 }
  0x88   : > { %3376 = vmatprep.subr.bf16.mxu1 %v3646_v1  ;;  %1449 = vmatprep.subr.bf16.mxu0 %v3646_v1 }
  0x8d   : > { %737 = vmatmul.mubr.bf16.gmra.mxu0 %v3489_v32 }
  0x8e   : > { %744 = vmatprep.mubr.bf16.mxu0 %v3490_v33 }
  0x95   : > { %745 = vmatmul.mubr.bf16.gmra.mxu0 %v3492_v34 }
  0x96   : > { %752 = vmatprep.mubr.bf16.mxu0 %v3493_v35 }
  0x9d   : > { %753 = vmatmul.mubr.bf16.gmra.mxu0 %v3495_v36  ;;  %v3530_v36 = vld [vmem:[%s4858_s3 + $0xa8] sm:$0xff]  }
  0x9e   : > { %760 = vmatprep.mubr.bf16.mxu0 %v3496_v37  ;;  %3388 = vmatpush2.bf16.msra.mxu1 %v3530_v36 }
  0x9f   : > { %1450 = vmatpush2.bf16.msra.mxu0 %v3530_v36  ;;  %3377 = vmatprep.subr.bf16.mxu1 %v3646_v1 }
  0xa0   : > { %1451 = vmatprep.subr.bf16.mxu0 %v3646_v1 }
  0xa5   : > { %761 = vmatmul.mubr.bf16.gmra.mxu0 %v3498_v38 }
  0xa6   : > { %768 = vmatprep.mubr.bf16.mxu0 %v3499_v39 }
  0xad   : > { %769 = vmatmul.mubr.bf16.gmra.mxu0 %v3501_v40 }
  0xae   : > { %776 = vmatprep.mubr.bf16.mxu0 %v3502_v41 }
  0xb5   : > { %777 = vmatmul.mubr.bf16.gmra.mxu0 %v3504_v42  ;;  %v3531_v42 = vld [vmem:[%s4858_s3 + $0xa0] sm:$0xff]  }
  0xb6   : > { %784 = vmatprep.mubr.bf16.mxu0 %v3505_v43  ;;  %3389 = vmatpush2.bf16.msra.mxu1 %v3531_v42 }
  0xb7   : > { %1452 = vmatpush2.bf16.msra.mxu0 %v3531_v42  ;;  %1657 = vmatprep.subr.bf16.mxu1 %v3646_v1 }
  0xb8   : > { %1918 = vmatprep.subr.bf16.mxu0 %v3646_v1 }
  0xbd   : > { %785 = vmatmul.mubr.bf16.gmra.mxu0 %v3507_v44 }
  0xbe   : > { %792 = vmatprep.mubr.bf16.mxu0 %v3508_v45 }
  0xc5   : > { %793 = vmatmul.mubr.bf16.gmra.mxu0 %v3510_v46 }
  0xc6   : > { %800 = vmatprep.mubr.bf16.mxu0 %v3511_v47 }
  0xcd   : > { %801 = vmatmul.mubr.bf16.gmra.mxu0 %v3513_v48 }
  0xce   : > { %808 = vmatprep.mubr.bf16.mxu0 %v3514_v49 }
  0xd5   : > { %809 = vmatmul.mubr.bf16.gmra.mxu0 %v3516_v50 }
  0xd6   : > { %816 = vmatprep.mubr.bf16.mxu0 %v3517_v51 }
  0xdd   : > { %817 = vmatmul.mubr.bf16.gmra.mxu0 %v3519_v52 }
 0x115   : > { %v682_v58 = vpop.f32.mrf.mxu0 }
 0x117   : > { %v684_v59 = vpop.f32.mrf.mxu0 }
 0x119   : > { %v685_v60 = vpop.f32.mrf.mxu0 }
 0x11b   : > { %v687_v61 = vpop.f32.mrf.mxu0 }
 0x11d   : > { %v690_v63 = vpop.f32.mrf.mxu0 }
 0x11e   : > { %v691_v2 = vadd.f32 %v3883_v62, %v690_v63 }
 0x11f   : > { %v692_v0 = vpop.f32.mrf.mxu0 }
 0x120   : > { %v827_v8 = vmax.f32 %v691_v2, 0.0 }
 0x121   : > { %v693_v4 = vpop.f32.mrf.mxu0 }
 0x122   : > { %v694_v5 = vadd.f32 %v3883_v62, %v693_v4 }
 0x123   : > { %v695_v7 = vpop.f32.mrf.mxu0 }
 0x124   : > { %v828_v9 = vmax.f32 %v694_v5, 0.0 }
 0x125   : > { %v698_v10 = vpop.f32.mrf.mxu0 }
 0x126   : > { %v3895_v11 = vpack.c.bf16 %v828_v9, %v827_v8  ;;  %v699_v15 = vadd.f32 %v3883_v62, %v698_v10 }
 0x127   : > { %v700_v13 = vpop.f32.mrf.mxu0 }
 0x128   : > { %v896_v14 = vshll.u32 %v3895_v11, 16  ;;  %v893_v16 = vshrl.u32 %v3895_v11, 16  ;;  %v829_v24 = vmax.f32 %v699_v15, 0.0 }
 0x129   : > { %v701_v17 = vpop.f32.mrf.mxu0 }
 0x12a   : > { %v702_v18 = vadd.f32 %v3883_v62, %v701_v17  ;;  %v1052_v19 = vrot.slane %v896_v14, 1  ;;  %v895_v21 = vrot.slane %v893_v16, 7 }
 0x12b   : > { %v703_v22 = vpop.f32.mrf.mxu0 }
 0x12c   : > { %v830_v25 = vmax.f32 %v702_v18, 0.0  ;;  %v1053_v26 = vor.u32 %v1052_v19, %v893_v16  ;;  %v3916_v27 = vor.u32 %v896_v14, %v895_v21 }
 0x12d   : > { %v706_v28 = vpop.f32.mrf.mxu0 }
 0x12e   : > { %v3918_v29 = vpack.c.bf16 %v830_v25, %v829_v24  ;;  %v3922_v30 = vsel %vm3910_vm2, %v1053_v26, 0  ;;  %v707_v33 = vadd.f32 %v3883_v62, %v706_v28 }
 0x12f   : > { %v708_v32 = vpop.f32.mrf.mxu0  ;;  %3143 = vmatprep.mubr.msk.bf16.mxu0 %vm1179_vm3, %v3922_v30 }
 0x130   : > { %v831_v38 = vmax.f32 %v707_v33, 0.0 }
 0x131   : > { %v709_v34 = vpop.f32.mrf.mxu0 }
 0x132   : > { %v710_v35 = vadd.f32 %v3883_v62, %v709_v34 }
 0x133   : > { %v711_v37 = vpop.f32.mrf.mxu0 }
 0x134   : > { %v832_v39 = vmax.f32 %v710_v35, 0.0 }
 0x135   : > { %v714_v40 = vpop.f32.mrf.mxu0 }
 0x136   : > { %v3938_v41 = vpack.c.bf16 %v832_v39, %v831_v38  ;;  %v715_v44 = vadd.f32 %v3883_v62, %v714_v40 }
 0x137   : > { %v716_v43 = vpop.f32.mrf.mxu0 }
 0x138   : > { %v833_v48 = vmax.f32 %v715_v44, 0.0 }
 0x139   : > { %v717_v45 = vpop.f32.mrf.mxu0 }
 0x13a   : > { %v718_v46 = vadd.f32 %v3883_v62, %v717_v45 }
 0x13b   : > { %v719_v47 = vpop.f32.mrf.mxu0 }
 0x13c   : > { %v834_v49 = vmax.f32 %v718_v46, 0.0 }
 0x13d   : > { %v3949_v50 = vpop.f32.mrf.mxu0 }
 0x13e   : > { %v3951_v51 = vpack.c.bf16 %v834_v49, %v833_v48 }
 0x13f   : > { %v724_v52 = vpop.f32.mrf.mxu0 }
 0x141   : > { %v3953_v53 = vpop.f32.mrf.mxu0 }
 0x143   : > { %v727_v54 = vpop.f32.mrf.mxu0 }
 0x145   : > { %v3955_v55 = vpop.f32.mrf.mxu0 }
 0x147   : > { %v732_v56 = vpop.f32.mrf.mxu0 }
 0x149   : > { %v3957_v57 = vpop.f32.mrf.mxu0 }
 0x14b   : > { %v735_v58 = vpop.f32.mrf.mxu0 }
 0x14d   : > { %v738_v59 = vpop.f32.mrf.mxu0 }
 0x14e   : > { %v739_v61 = vadd.f32 %v3883_v62, %v738_v59 }
 0x14f   : > { %v740_v60 = vpop.f32.mrf.mxu0 }
 0x150   : > { %v839_v3 = vmax.f32 %v739_v61, 0.0 }
 0x151   : > { %v741_v63 = vpop.f32.mrf.mxu0 }
 0x152   : > { %v742_v0 = vadd.f32 %v3883_v62, %v741_v63 }
 0x153   : > { %v743_v2 = vpop.f32.mrf.mxu0 }
 0x154   : > { %v840_v4 = vmax.f32 %v742_v0, 0.0  ;;  %v726_v2 = vadd.f32 %v3883_v62, %v3953_v53 }
 0x155   : > { %v746_v5 = vpop.f32.mrf.mxu0 }
 0x156   : > { %v868_v6 = vpack.c.bf16 %v840_v4, %v839_v3  ;;  %v747_v9 = vadd.f32 %v3883_v62, %v746_v5 }
 0x157   : > { %v748_v7 = vpop.f32.mrf.mxu0 }
 0x158   : > { %v938_v8 = vshll.u32 %v868_v6, 16  ;;  %1157 = vrot.lane.b32.xlu0 %v868_v6, %s3647_s17  ;;  %v935_v10 = vshrl.u32 %v868_v6, 16  ;;  %v841_v17 = vmax.f32 %v747_v9, 0.0  ;;  %v734_v9 = vadd.f32 %v3883_v62, %v3957_v57 }
 0x159   : > { %v749_v12 = vpop.f32.mrf.mxu0 }
 0x15a   : > { %v750_v13 = vadd.f32 %v3883_v62, %v749_v12  ;;  %v937_v14 = vrot.slane %v935_v10, 7  ;;  %v1064_v15 = vrot.slane %v938_v8, 1 }
 0x15b   : > { %v751_v16 = vpop.f32.mrf.mxu0 }
 0x15c   : > { %v842_v18 = vmax.f32 %v750_v13, 0.0  ;;  %v1065_v19 = vor.u32 %v1064_v15, %v935_v10  ;;  %v3964_v20 = vor.u32 %v938_v8, %v937_v14  ;;  %v836_v8 = vmax.f32 %v726_v2, 0.0 }
 0x15d   : > { %v754_v21 = vpop.f32.mrf.mxu0  ;;  %v731_v13 = vadd.f32 %v3883_v62, %v3955_v55  ;;  %v838_v16 = vmax.f32 %v734_v9, 0.0 }
 0x15e   : > { %v3966_v22 = vpack.c.bf16 %v842_v18, %v841_v17  ;;  %v3970_v24 = vsel %vm3910_vm2, %v1065_v19, 0  ;;  %v755_v26 = vadd.f32 %v3883_v62, %v754_v21 }
 0x15f   : > { %v756_v25 = vpop.f32.mrf.mxu0  ;;  %3149 = vmatprep.mubr.msk.bf16.mxu1 %vm1179_vm3, %v3970_v24  ;;  %v837_v18 = vmax.f32 %v731_v13, 0.0 }
 0x160   : > { %1159 = vrot.lane.b32.xlu0 %v3966_v22, %s3647_s17  ;;  %v843_v33 = vmax.f32 %v755_v26, 0.0 }
 0x161   : > { %v757_v28 = vpop.f32.mrf.mxu0  ;;  %v4022_v25 = vpack.c.bf16 %v838_v16, %v837_v18 }
 0x162   : > { %v758_v31 = vadd.f32 %v3883_v62, %v757_v28 }
 0x163   : > { %v759_v32 = vpop.f32.mrf.mxu0 }
 0x164   : > { %v844_v34 = vmax.f32 %v758_v31, 0.0 }
 0x165   : > { %v762_v35 = vpop.f32.mrf.mxu0 }
 0x166   : > { %v3978_v36 = vpack.c.bf16 %v844_v34, %v843_v33  ;;  %v763_v38 = vadd.f32 %v3883_v62, %v762_v35 }
 0x167   : > { %v764_v37 = vpop.f32.mrf.mxu0 }
 0x168   : > { %1161 = vrot.lane.b32.xlu1 %v3978_v36, %s3647_s17  ;;  %v845_v43 = vmax.f32 %v763_v38, 0.0  ;;  %v949_v18 = vshrl.u32 %v3978_v36, 16 }
 0x169   : > { %v765_v39 = vpop.f32.mrf.mxu0 }
 0x16a   : > { %v766_v40 = vadd.f32 %v3883_v62, %v765_v39 }
 0x16b   : > { %v767_v42 = vpop.f32.mrf.mxu0 }
 0x16c   : > { %v846_v44 = vmax.f32 %v766_v40, 0.0 }
 0x16d   : > { %v770_v45 = vpop.f32.mrf.mxu0 }
 0x16e   : > { %v3984_v46 = vpack.c.bf16 %v846_v44, %v845_v43  ;;  %v771_v48 = vadd.f32 %v3883_v62, %v770_v45 }
 0x16f   : > { %v772_v47 = vpop.f32.mrf.mxu0 }
 0x170   : > { %1163 = vrot.lane.b32.xlu1 %v3984_v46, %s3647_s17  ;;  %v847_v56 = vmax.f32 %v771_v48, 0.0 }
 0x171   : > { %v773_v49 = vpop.f32.mrf.mxu0 }
 0x172   : > { %v774_v52 = vadd.f32 %v3883_v62, %v773_v49 }
 0x173   : > { %v775_v54 = vpop.f32.mrf.mxu0 }
 0x174   : > { %v848_v58 = vmax.f32 %v774_v52, 0.0  ;;  %1145 = vrot.lane.b32.xlu1 %v3895_v11, %s3647_s17  ;;  %v723_v11 = vadd.f32 %v3883_v62, %v3949_v50 }
 0x175   : > { %v778_v59 = vpop.f32.mrf.mxu0 }
 0x176   : > { %v3992_v60 = vpack.c.bf16 %v848_v58, %v847_v56  ;;  %v779_v63 = vadd.f32 %v3883_v62, %v778_v59  ;;  %v835_v53 = vmax.f32 %v723_v11, 0.0 }
 0x177   : > { %v780_v61 = vpop.f32.mrf.mxu0 }
 0x178   : > { %1165 = vrot.lane.b32.xlu0 %v3992_v60, %s3647_s17  ;;  %1147 = vrot.lane.b32.xlu1 %v3918_v29, %s3647_s17  ;;  %v849_v5 = vmax.f32 %v779_v63, 0.0  ;;  %v4017_v15 = vpack.c.bf16 %v836_v8, %v835_v53  ;;  %v952_v8 = vshll.u32 %v3978_v36, 16  ;;  %v3532_v53 = vld [vmem:[%s4858_s3 + $0x38] sm:$0xff]  }
 0x179   : > { %v781_v0 = vpop.f32.mrf.mxu0 }
 0x17a   : > { %v782_v3 = vadd.f32 %v3883_v62, %v781_v0 }
 0x17b   : > { %v783_v4 = vpop.f32.mrf.mxu0 }
 0x17c   : > { %v850_v6 = vmax.f32 %v782_v3, 0.0  ;;  %1149 = vrot.lane.b32.xlu1 %v3938_v41, %s3647_s17 }
 0x17d   : > { %v786_v7 = vpop.f32.mrf.mxu0 }
 0x17e   : > { %v4008_v10 = vpack.c.bf16 %v850_v6, %v849_v5  ;;  %v787_v14 = vadd.f32 %v3883_v62, %v786_v7  ;;  %v945_v6 = vshll.u32 %v3966_v22, 16 }
 0x17f   : > { %v788_v12 = vpop.f32.mrf.mxu0 }
 0x180   : > { %1167 = vrot.lane.b32.xlu0 %v4008_v10, %s3647_s17  ;;  %1151 = vrot.lane.b32.xlu1 %v3951_v51, %s3647_s17  ;;  %v851_v19 = vmax.f32 %v787_v14, 0.0  ;;  %v1066_v7 = vrot.slane %v945_v6, 1  ;;  %v1039_v14 = vsel %vm4055_vm6, 0, %v3964_v20  ;;  %v3559_v12 = vld [vmem:[%s4860_s5 + $0x20] ss:$8 sps:$4 sm:$0xff]  }
 0x181   : > { %v789_v50 = vpop.f32.mrf.mxu0 }
 0x182   : > { %v790_v57 = vadd.f32 %v3883_v62, %v789_v50 }
 0x183   : > { %v791_v17 = vpop.f32.mrf.mxu0 }
 0x184   : > { %v852_v21 = vmax.f32 %v790_v57, 0.0  ;;  %1153 = vrot.lane.b32.xlu1 %v4017_v15, %s3647_s17  ;;  %v1068_v57 = vrot.slane %v952_v8, 1  ;;  %v3533_v17 = vld [vmem:[%s4858_s3 + $0x30] sm:$0xff]  }
 0x185   : > { %v794_v55 = vpop.f32.mrf.mxu0 }
 0x186   : > { %v4024_v26 = vpack.c.bf16 %v852_v21, %v851_v19  ;;  %v795_v31 = vadd.f32 %v3883_v62, %v794_v55  ;;  %v959_v19 = vshll.u32 %v3984_v46, 16  ;;  %v1069_v21 = vor.u32 %v1068_v57, %v949_v18  ;;  %v3534_v55 = vld [vmem:[%s4858_s3 + $0x28] sm:$0xff]  }
 0x187   : > { %v796_v28 = vpop.f32.mrf.mxu0 }
 0x188   : > { %1169 = vrot.lane.b32.xlu0 %v4024_v26, %s3647_s17  ;;  %1155 = vrot.lane.b32.xlu1 %v4022_v25, %s3647_s17  ;;  %v853_v35 = vmax.f32 %v795_v31, 0.0  ;;  %v4093_v36 = vsel %vm3910_vm2, %v1069_v21, 0  ;;  %v3538_v21 = vld [vmem:[%s4858_s3 + $0xf0] sm:$0xff]  }
 0x189   : > { %v797_v32 = vpop.f32.mrf.mxu0 }
 0x18a   : > { %v798_v33 = vadd.f32 %v3883_v62, %v797_v32  ;;  %v951_v32 = vrot.slane %v949_v18, 7  ;;  %v980_v18 = vshll.u32 %v4024_v26, 16 }
 0x18b   : > { %v799_v34 = vpop.f32.mrf.mxu0 }
 0x18c   : > { %v854_v37 = vmax.f32 %v798_v33, 0.0  ;;  %1177 = vrot.lane.b32.xlu1 %v3646_v1, %s3647_s17  ;;  %v1070_v34 = vrot.slane %v959_v19, 1 }
 0x18d   : > { %v802_v38 = vpop.f32.mrf.mxu0 }
 0x18e   : > { %v4034_v39 = vpack.c.bf16 %v854_v37, %v853_v35  ;;  %v803_v42 = vadd.f32 %v3883_v62, %v802_v38  ;;  %v3535_v35 = vld [vmem:[%s4858_s3 + $0x20] sm:$0xff]   ;;  %v954_v37 = vor.u32 %v952_v8, %v951_v32  ;;  %v956_v38 = vshrl.u32 %v3984_v46, 16 }
 0x18f   : > { %v804_v40 = vpop.f32.mrf.mxu0  ;;  %v903_v46 = vshll.u32 %v3918_v29, 16  ;;  %v907_v32 = vshrl.u32 %v3938_v41, 16 }
 0x190   : > { %1171 = vrot.lane.b32.xlu0 %v4034_v39, %s3647_s17  ;;  %v855_v47 = vmax.f32 %v803_v42, 0.0  ;;  %v966_v40 = vshll.u32 %v3992_v60, 16  ;;  %v1071_v42 = vor.u32 %v1070_v34, %v956_v38 }
 0x191   : > { %v805_v43 = vpop.f32.mrf.mxu0 }
 0x192   : > { %v806_v44 = vadd.f32 %v3883_v62, %v805_v43  ;;  %v3536_v43 = vld [vmem:[%s4858_s3 + $0x18] sm:$0xff]  }
 0x193   : > { %v807_v45 = vpop.f32.mrf.mxu0 }
 0x194   : > { %v856_v48 = vmax.f32 %v806_v44, 0.0  ;;  %v1041_v45 = vsel %vm4055_vm6, 0, %v954_v37 }
 0x195   : > { %v810_v49 = vpop.f32.mrf.mxu0 }
 0x196   : > { %v4040_v52 = vpack.c.bf16 %v856_v48, %v855_v47  ;;  %v811_v56 = vadd.f32 %v3883_v62, %v810_v49  ;;  %v958_v47 = vrot.slane %v956_v38, 7  ;;  %v4116_v49 = vsel %vm3910_vm2, %v1071_v42, 0 }
 0x197   : > { %v812_v54 = vpop.f32.mrf.mxu0  ;;  %v917_v38 = vshll.u32 %v3951_v51, 16 }
 0x198   : > { %1173 = vrot.lane.b32.xlu0 %v4040_v52, %s3647_s17  ;;  %v857_v63 = vmax.f32 %v811_v56, 0.0  ;;  %v1072_v54 = vrot.slane %v966_v40, 1  ;;  %v3539_v56 = vld [vmem:[%s4858_s3 + $0x10] sm:$0xff]  }
 0x199   : > { %v813_v58 = vpop.f32.mrf.mxu0 }
 0x19a   : > { %v814_v59 = vadd.f32 %v3883_v62, %v813_v58  ;;  %v942_v62 = vshrl.u32 %v3966_v22, 16  ;;  %v961_v58 = vor.u32 %v959_v19, %v958_v47 }
 0x19b   : > { %v815_v61 = vpop.f32.mrf.mxu0 }
 0x19c   : > { %v858_v0 = vmax.f32 %v814_v59, 0.0  ;;  %v1067_v9 = vor.u32 %v1066_v7, %v942_v62  ;;  %v944_v50 = vrot.slane %v942_v62, 7  ;;  %v963_v59 = vshrl.u32 %v3992_v60, 16 }
 0x19d   : > { %v818_v2 = vpop.f32.mrf.mxu0  ;;  %v973_v61 = vshll.u32 %v4008_v10, 16  ;;  %v910_v7 = vshll.u32 %v3938_v41, 16 }
 0x19e   : > { %v4046_v3 = vpack.c.bf16 %v858_v0, %v857_v63  ;;  %v4071_v22 = vsel %vm3910_vm2, %v1067_v9, 0  ;;  %v947_v20 = vor.u32 %v945_v6, %v944_v50  ;;  %v1073_v63 = vor.u32 %v1072_v54, %v963_v59  ;;  %v3541_v2 = vld [vmem:[%s4858_s3 + $0x8] sm:$0xff]  }
 0x19f   : > { %v820_v4 = vpop.f32.mrf.mxu0  ;;  %v1054_v0 = vrot.slane %v903_v46, 1  ;;  %v965_v6 = vrot.slane %v963_v59, 7  ;;  %v1074_v9 = vrot.slane %v973_v61, 1  ;;  %v970_v50 = vshrl.u32 %v4008_v10, 16 }
 0x1a0   : > { %1175 = vrot.lane.b32.xlu0 %v4046_v3, %s3647_s17  ;;  %v1040_v31 = vsel %vm4055_vm6, 0, %v947_v20  ;;  %v4140_v62 = vsel %vm3910_vm2, %v1073_v63, 0  ;;  %v1056_v10 = vrot.slane %v910_v7, 1  ;;  %v977_v54 = vshrl.u32 %v4024_v26, 16 }
 0x1a1   : > { %v821_v11 = vpop.f32.mrf.mxu0  ;;  %v1075_v19 = vor.u32 %v1074_v9, %v970_v50  ;;  %v972_v34 = vrot.slane %v970_v50, 7  ;;  %v987_v63 = vshll.u32 %v4034_v39, 16  ;;  %v994_v26 = vshll.u32 %v4040_v52, 16 }
 0x1a2   : > { %v1042_v11 = vsel %vm4055_vm6, 0, %v961_v58  ;;  %v3549_v58 = vld [vmem:[%s4858_s3 + $0x50] sm:$0xff]   ;;  %v979_v9 = vrot.slane %v977_v54, 7 }
 0x1a3   : > { %v823_v5 = vpop.f32.mrf.mxu0  ;;  %v4186_v42 = vsel %vm3910_vm2, %v1075_v19, 0  ;;  %v1078_v50 = vrot.slane %v987_v63, 1 }
 0x1a4   : > { %1143 = vrot.lane.b32.xlu0 %v3646_v1, %s3647_s17  ;;  %v900_v5 = vshrl.u32 %v3918_v29, 16  ;;  %v3537_v29 = vld [vmem:[%s4858_s3 + $0xf8] sm:$0xff]   ;;  %v982_v19 = vor.u32 %v980_v18, %v979_v9  ;;  %s2968_s17 = sshll.u32 %s4678_s15, 4  ;;  %s4805_s17 = int_to_ptr.vmem [resolvable:$true] %s2968_s17 }
 0x1a5   : > { %p3575_p1 = scmp.lt.s32.totalorder %s4805_s17, %s3573_s23 }
 0x1a6   : > { %v1055_v8 = vor.u32 %v1054_v0, %v900_v5  ;;  %v902_v57 = vrot.slane %v900_v5, 7 }
 0x1ca   : > { %v1158_v13 = vpop.permute.xlu0 %1157 }
 0x1cb   : > { %v4066_v16 = vsel %vm1179_vm3, %v1039_v14, %v1158_v13  ;;  %v1033_v13 = vsel %vm4055_vm6, 0, %v3916_v27  ;;  %v968_v14 = vor.u32 %v966_v40, %v965_v6  ;;  %v4162_v27 = vsel %vm3910_vm2, %v1055_v8, 0 }
 0x1cc   : > { %1502 = vmatmul.mubr.bf16.vlgmr.msra.gmra.mxu1 %v4066_v16  ;;  %v914_v8 = vshrl.u32 %v3951_v51, 16  ;;  %v1080_v51 = vrot.slane %v994_v26, 1 }
 0x1cd   : > { %1658 = vmatpush1.bf16.msra.mxu1 %v3532_v53  ;;  %3150 = vmatprep.mubr.msk.bf16.mxu1 %vm1179_vm3, %v4071_v22 }
 0x1ce   : > { %1659 = vmatprep.subr.bf16.mxu1 %v3646_v1 }
 0x1d1   : > { %1660 = vmatpush1.bf16.msra.mxu1 %v3533_v17  ;;  %v3544_v17 = vld [vmem:[%s4858_s3] sm:$0xff]  }
 0x1d2   : > { %v1160_v28 = vpop.permute.xlu0 %1159  ;;  %1661 = vmatprep.subr.bf16.mxu1 %v3646_v1 }
 0x1d3   : > { %v4088_v33 = vsel %vm1179_vm3, %v1040_v31, %v1160_v28  ;;  %v1043_v28 = vsel %vm4055_vm6, 0, %v968_v14  ;;  %v905_v31 = vor.u32 %v903_v46, %v902_v57  ;;  %v975_v46 = vor.u32 %v973_v61, %v972_v34  ;;  %v3543_v57 = vld [vmem:[%s4858_s3 + $0xd8] sm:$0xff]  }
 0x1d4   : > { %1510 = vmatmul.mubr.bf16.gmra.mxu1 %v4088_v33 }
 0x1d5   : > { %3151 = vmatprep.mubr.msk.bf16.mxu1 %vm1179_vm3, %v4093_v36  ;;  %1662 = vmatpush1.bf16.msra.mxu1 %v3534_v55  ;;  %v1034_v47 = vsel %vm4055_vm6, 0, %v905_v31  ;;  %v1044_v5 = vsel %vm4055_vm6, 0, %v975_v46  ;;  %v3558_v31 = vld [vmem:[%s4860_s5 + $0x34] ss:$8 sps:$4 sm:$0xff]  }
 0x1d6   : > { %1663 = vmatprep.subr.bf16.mxu1 %v3646_v1 }
 0x1d9   : > { %1664 = vmatpush1.bf16.msra.mxu1 %v3535_v35  ;;  %v3547_v35 = vld [vmem:[%s4858_s3 + $0x58] sm:$0xff]  }
 0x1da   : > { %v1162_v44 = vpop.permute.xlu1 %1161  ;;  %1665 = vmatprep.subr.bf16.mxu1 %v3646_v1 }
 0x1db   : > { %v4110_v48 = vsel %vm1179_vm3, %v1041_v45, %v1162_v44  ;;  %v1076_v44 = vrot.slane %v980_v18, 1  ;;  %v3540_v45 = vld [vmem:[%s4858_s3 + $0xe8] sm:$0xff]  }
 0x1dc   : > { %1518 = vmatmul.mubr.bf16.gmra.mxu1 %v4110_v48 }
 0x1dd   : > { %3152 = vmatprep.mubr.msk.bf16.mxu1 %vm1179_vm3, %v4116_v49  ;;  %1666 = vmatpush1.bf16.msra.mxu1 %v3536_v43  ;;  %v1057_v43 = vor.u32 %v1056_v10, %v907_v32  ;;  %v1077_v0 = vor.u32 %v1076_v44, %v977_v54  ;;  %v984_v10 = vshrl.u32 %v4034_v39, 16  ;;  %v931_v54 = vshll.u32 %v4022_v25, 16  ;;  %v3548_v39 = vld [vmem:[%s4858_s3 + $0xc0] sm:$0xff]  }
 0x1de   : > { %1667 = vmatprep.subr.bf16.mxu1 %v3646_v1 }
 0x1df   : > { %v4210_v61 = vsel %vm3910_vm2, %v1057_v43, 0  ;;  %v4236_v41 = vsel %vm3910_vm2, %v1077_v0, 0  ;;  %v1045_v43 = vsel %vm4055_vm6, 0, %v982_v19 }
 0x1e1   : > { %1668 = vmatpush1.bf16.msra.mxu1 %v3539_v56  ;;  %v909_v56 = vrot.slane %v907_v32, 7  ;;  %v1079_v32 = vor.u32 %v1078_v50, %v984_v10 }
 0x1e2   : > { %v1164_v4 = vpop.permute.xlu1 %1163  ;;  %1669 = vmatprep.subr.bf16.mxu1 %v3646_v1 }
 0x1e3   : > { %v4134_v60 = vsel %vm1179_vm3, %v1042_v11, %v1164_v4  ;;  %v3542_v4 = vld [vmem:[%s4858_s3 + $0xe0] sm:$0xff]   ;;  %v912_v6 = vor.u32 %v910_v7, %v909_v56 }
 0x1e4   : > { %1526 = vmatmul.mubr.bf16.gmra.mxu1 %v4134_v60 }
 0x1e5   : > { %3153 = vmatprep.mubr.msk.bf16.mxu1 %vm1179_vm3, %v4140_v62  ;;  %1670 = vmatpush1.bf16.msra.mxu1 %v3541_v2  ;;  %v1058_v2 = vrot.slane %v917_v38, 1 }
 0x1e6   : > { %v1146_v53 = vpop.permute.xlu1 %1145  ;;  %1671 = vmatprep.subr.bf16.mxu1 %v3646_v1 }
 0x1e7   : > { %v4156_v20 = vsel %vm1179_vm3, %v1033_v13, %v1146_v53  ;;  %v924_v13 = vshll.u32 %v4017_v15, 16  ;;  %v1059_v7 = vor.u32 %v1058_v2, %v914_v8 }
 0x1e8   : > { %1454 = vmatmul.mubr.bf16.vlgmr.msra.gmra.mxu0 %v4156_v20 }
 0x1e9   : > { %3144 = vmatprep.mubr.msk.bf16.mxu0 %vm1179_vm3, %v4162_v27  ;;  %1919 = vmatpush1.bf16.msra.mxu0 %v3537_v29  ;;  %v3552_v29 = vld [vmem:[%s4858_s3 + $0x48] sm:$0xff]   ;;  %v4265_v18 = vsel %vm3910_vm2, %v1059_v7, 0  ;;  %v1060_v34 = vrot.slane %v924_v13, 1  ;;  %v928_v7 = vshrl.u32 %v4022_v25, 16  ;;  %v3550_v25 = vld [vmem:[%s4858_s3 + $0x118] sm:$0xff]  }
 0x1ea   : > { %v1166_v55 = vpop.permute.xlu0 %1165  ;;  %1920 = vmatprep.subr.bf16.mxu0 %v3646_v1  ;;  %1672 = vmatpush1.bf16.msra.mxu1 %v3544_v17  ;;  %v1148_v40 = vpop.permute.xlu1 %1147  ;;  %v1035_v17 = vsel %vm4055_vm6, 0, %v912_v6  ;;  %v1001_v6 = vshll.u32 %v4046_v3, 16 }
 0x1eb   : > { %v4179_v37 = vsel %vm1179_vm3, %v1043_v28, %v1166_v55  ;;  %1681 = vmatprep.subr.bf16.mxu1 %v3646_v1  ;;  %v4203_v59 = vsel %vm1179_vm3, %v1034_v47, %v1148_v40  ;;  %v3555_v55 = vld [vmem:[%s4858_s3 + $0x40] sm:$0xff]   ;;  %v986_v47 = vrot.slane %v984_v10, 7 }
 0x1ec   : > { %1534 = vmatmul.mubr.bf16.gmra.mxu1 %v4179_v37 }
 0x1ed   : > { %3154 = vmatprep.mubr.msk.bf16.mxu1 %vm1179_vm3, %v4186_v42  ;;  %1921 = vmatpush1.bf16.msra.mxu0 %v3538_v21  ;;  %v916_v21 = vrot.slane %v914_v8, 7  ;;  %v989_v2 = vor.u32 %v987_v63, %v986_v47 }
 0x1ee   : > { %1922 = vmatprep.subr.bf16.mxu0 %v3646_v1  ;;  %1682 = vmatpush2.bf16.msra.mxu1 %v3547_v35  ;;  %v1150_v14 = vpop.permute.xlu1 %1149  ;;  %v3545_v35 = vld [vmem:[%s4858_s3 + $0xd0] sm:$0xff]  }
 0x1ef   : > { %1683 = vmatprep.subr.bf16.mxu1 %v3646_v1  ;;  %v4255_v28 = vsel %vm1179_vm3, %v1035_v17, %v1150_v14  ;;  %v919_v44 = vor.u32 %v917_v38, %v916_v21  ;;  %v1046_v63 = vsel %vm4055_vm6, 0, %v989_v2  ;;  %v1082_v21 = vrot.slane %v1001_v6, 1 }
 0x1f0   : > { %1462 = vmatmul.mubr.bf16.gmra.mxu0 %v4203_v59 }
 0x1f1   : > { %3145 = vmatprep.mubr.msk.bf16.mxu0 %vm1179_vm3, %v4210_v61  ;;  %1923 = vmatpush1.bf16.msra.mxu0 %v3540_v45  ;;  %v921_v45 = vshrl.u32 %v4017_v15, 16  ;;  %v3546_v15 = vld [vmem:[%s4858_s3 + $0xc8] sm:$0xff]   ;;  %v1036_v38 = vsel %vm4055_vm6, 0, %v919_v44 }
 0x1f2   : > { %v1168_v11 = vpop.permute.xlu0 %1167  ;;  %1924 = vmatprep.subr.bf16.mxu0 %v3646_v1  ;;  %1684 = vmatpush2.bf16.msra.mxu1 %v3549_v58  ;;  %v1152_v56 = vpop.permute.xlu1 %1151  ;;  %v4285_v58 = vsel %vm3910_vm2, %v1079_v32, 0  ;;  %v930_v32 = vrot.slane %v928_v7, 7 }
 0x1f3   : > { %v4229_v53 = vsel %vm1179_vm3, %v1044_v5, %v1168_v11  ;;  %1685 = vmatprep.subr.bf16.mxu1 %v3646_v1  ;;  %v1061_v0 = vor.u32 %v1060_v34, %v921_v45  ;;  %v923_v11 = vrot.slane %v921_v45, 7  ;;  %v4299_v5 = vsel %vm1179_vm3, %v1036_v38, %v1152_v56 }
 0x1f4   : > { %1542 = vmatmul.mubr.bf16.gmra.mxu1 %v4229_v53  ;;  %v933_v44 = vor.u32 %v931_v54, %v930_v32  ;;  %v1050_v38 = vrot.slane %v3646_v1, 1 }
 0x1f5   : > { %3155 = vmatprep.mubr.msk.bf16.mxu1 %vm1179_vm3, %v4236_v41  ;;  %1925 = vmatpush1.bf16.msra.mxu0 %v3542_v4  ;;  %v991_v4 = vshrl.u32 %v4040_v52, 16  ;;  %v4305_v8 = vsel %vm3910_vm2, %v1061_v0, 0  ;;  %v926_v14 = vor.u32 %v924_v13, %v923_v11 }
 0x1f6   : > { %1926 = vmatprep.subr.bf16.mxu0 %v3646_v1  ;;  %1686 = vmatpush2.bf16.msra.mxu1 %v3552_v29  ;;  %v1062_v29 = vrot.slane %v931_v54, 1  ;;  %v1154_v17 = vpop.permute.xlu1 %1153  ;;  %v1038_v54 = vsel %vm4055_vm6, 0, %v933_v44 }
 0x1f7   : > { %1687 = vmatprep.subr.bf16.mxu1 %v3646_v1  ;;  %v1081_v9 = vor.u32 %v1080_v51, %v991_v4  ;;  %v993_v50 = vrot.slane %v991_v4, 7  ;;  %v1037_v13 = vsel %vm4055_vm6, 0, %v926_v14  ;;  %v3553_v51 = vld [vmem:[%s4858_s3 + $0x108] sm:$0xff]   ;;  %v3554_v4 = vld [vmem:[%s4858_s3 + $0x100] sm:$0xff]   ;;  %v3556_v14 = vld [vmem:[%s4860_s5 + $0x30] ss:$8 sps:$4 sm:$0xff]  }
 0x1f8   : > { %1470 = vmatmul.mubr.bf16.gmra.mxu0 %v4255_v28  ;;  %v1063_v10 = vor.u32 %v1062_v29, %v928_v7  ;;  %v4334_v34 = vsel %vm1179_vm3, %v1037_v13, %v1154_v17  ;;  %v4378_v29 = vsel %vm3910_vm2, %v1050_v38, 0  ;;  %v3561_v7 = vld [vmem:[%s4860_s5 + $0x24] ss:$8 sps:$4 sm:$0xff]  }
 0x1f9   : > { %3146 = vmatprep.mubr.msk.bf16.mxu0 %vm1179_vm3, %v4265_v18  ;;  %1927 = vmatpush1.bf16.msra.mxu0 %v3543_v57  ;;  %v4322_v19 = vsel %vm3910_vm2, %v1081_v9, 0 }
 0x1fa   : > { %v1170_v40 = vpop.permute.xlu0 %1169  ;;  %1928 = vmatprep.subr.bf16.mxu0 %v3646_v1  ;;  %1688 = vmatpush2.bf16.msra.mxu1 %v3555_v55  ;;  %v996_v55 = vor.u32 %v994_v26, %v993_v50  ;;  %v3551_v26 = vld [vmem:[%s4858_s3 + $0x110] sm:$0xff]   ;;  %v1156_v56 = vpop.permute.xlu1 %1155 }
 0x1fb   : > { %v4279_v46 = vsel %vm1179_vm3, %v1045_v43, %v1170_v40  ;;  %2314 = vmatprep.subr.bf16.mxu1 %v3558_v31  ;;  %v998_v31 = vshrl.u32 %v4046_v3, 16  ;;  %v1206_v2 = vsel %vm1179_vm3, %v1038_v54, %v1156_v56  ;;  %v3564_v50 = vld [vmem:[%s4860_s5 + $0x14] ss:$8 sps:$4 sm:$0xff]  }
 0x1fc   : > { %1550 = vmatmul.mubr.bf16.gmra.mxu1 %v4279_v46  ;;  %v1047_v43 = vsel %vm4055_vm6, 0, %v996_v55 }
 0x1fd   : > { %3156 = vmatprep.mubr.msk.bf16.mxu1 %vm1179_vm3, %v4285_v58  ;;  %1929 = vmatpush1.bf16.msra.mxu0 %v3545_v35  ;;  %v4339_v35 = vsel %vm3910_vm2, %v1063_v10, 0  ;;  %v1083_v40 = vor.u32 %v1082_v21, %v998_v31  ;;  %v1000_v45 = vrot.slane %v998_v31, 7 }
 0x1fe   : > { %1930 = vmatprep.subr.bf16.mxu0 %v3646_v1 }
 0x1ff   : > { %v4355_v0 = vsel %vm3910_vm2, %v1083_v40, 0 }
 0x200   : > { %1478 = vmatmul.mubr.bf16.gmra.mxu0 %v4299_v5 }
 0x201   : > { %3147 = vmatprep.mubr.msk.bf16.mxu0 %vm1179_vm3, %v4305_v8  ;;  %1931 = vmatpush1.bf16.msra.mxu0 %v3546_v15  ;;  %v1003_v15 = vor.u32 %v1001_v6, %v1000_v45  ;;  %v888_v6 = vrot.slane %v3646_v1, 7 }
 0x202   : > { %v1172_v52 = vpop.permute.xlu0 %1171  ;;  %1932 = vmatprep.subr.bf16.mxu0 %v3646_v1 }
 0x203   : > { %v4317_v57 = vsel %vm1179_vm3, %v1046_v63, %v1172_v52  ;;  %v1048_v9 = vsel %vm4055_vm6, 0, %v1003_v15  ;;  %v4388_v52 = vsel %vm4055_vm6, 0, %v888_v6 }
 0x204   : > { %1558 = vmatmul.mubr.bf16.gmra.mxu1 %v4317_v57 }
 0x205   : > { %3157 = vmatprep.mubr.msk.bf16.mxu1 %vm1179_vm3, %v4322_v19  ;;  %1933 = vmatpush1.bf16.msra.mxu0 %v3548_v39 }
 0x206   : > { %1942 = vmatprep.subr.bf16.mxu0 %v3646_v1 }
 0x208   : > { %1486 = vmatmul.mubr.bf16.gmra.mxu0 %v4334_v34 }
 0x209   : > { %3148 = vmatprep.mubr.msk.bf16.mxu0 %vm1179_vm3, %v4339_v35  ;;  %1943 = vmatpush2.bf16.msra.mxu0 %v3550_v25 }
 0x20a   : > { %v1174_v3 = vpop.permute.xlu0 %1173  ;;  %1944 = vmatprep.subr.bf16.mxu0 %v3646_v1 }
 0x20b   : > { %v4350_v47 = vsel %vm1179_vm3, %v1047_v43, %v1174_v3 }
 0x20c   : > { %1566 = vmatmul.mubr.bf16.gmra.mxu1 %v4350_v47 }
 0x20d   : > { %3158 = vmatprep.mubr.msk.bf16.mxu1 %vm1179_vm3, %v4355_v0  ;;  %1945 = vmatpush2.bf16.msra.mxu0 %v3551_v26 }
 0x20e   : > { %1946 = vmatprep.subr.bf16.mxu0 %v3646_v1 }
 0x210   : > { %1494 = vmatmul.mubr.bf16.gmra.mxu0 %v1206_v2 }
 0x211   : > { %1947 = vmatpush2.bf16.msra.mxu0 %v3553_v51  ;;  %3223 = vmatprep.mubr.msk.bf16.mxu0 %vm1179_vm3, %v4162_v27 }
 0x212   : > { %v1176_v11 = vpop.permute.xlu0 %1175  ;;  %1948 = vmatprep.subr.bf16.mxu0 %v3646_v1 }
 0x213   : > { %v4381_v39 = vsel %vm1179_vm3, %v1048_v9, %v1176_v11 }
 0x214   : > { %1574 = vmatmul.mubr.bf16.gmra.mxu1 %v4381_v39 }
 0x215   : > { %1949 = vmatpush2.bf16.msra.mxu0 %v3554_v4  ;;  %3171 = vmatprep.mubr.msk.bf16.mxu1 %vm1179_vm3, %v4378_v29 }
 0x216   : > { %v1144_v63 = vpop.permute.xlu0 %1143 }
 0x217   : > { %v1182_v23 = vsel %vm1179_vm3, %v4388_v52, %v1144_v63 }
 0x218   : > { %1951 = vmatmul.mubr.bf16.vlgmr.msra.gmra.mxu0 %v4203_v59 }
 0x219   : > { %3224 = vmatprep.mubr.msk.bf16.mxu0 %vm1179_vm3, %v4210_v61 }
 0x21c   : > { %1690 = vmatmul.mubr.bf16.vlgmr.msra.gmra.mxu1 %v1182_v23 }
 0x21d   : > { %3172 = vmatprep.mubr.msk.bf16.mxu1 %vm1179_vm3, %v3922_v30  ;;  %2315 = vmatpush1.bf16.msra.mxu1 %v3556_v14  ;;  %v3562_v30 = vld [vmem:[%s4860_s5 + $0x10] ss:$8 sps:$4 sm:$0xff]  }
 0x21e   : > { %2316 = vmatprep.subr.bf16.mxu1 %v3561_v7 }
 0x220   : > { %1959 = vmatmul.mubr.bf16.gmra.mxu0 %v4255_v28 }
 0x221   : > { %3225 = vmatprep.mubr.msk.bf16.mxu0 %vm1179_vm3, %v4265_v18  ;;  %2317 = vmatpush1.bf16.msra.mxu1 %v3559_v12 }
 0x222   : > { %2318 = vmatprep.subr.bf16.mxu1 %v3564_v50 }
 0x224   : > { %1698 = vmatmul.mubr.bf16.gmra.mxu1 %v4156_v20  ;;  %v3565_v20 = vld [vmem:[%s4860_s5] ss:$8 sps:$4 sm:$0xff]  }
 0x225   : > { %3173 = vmatprep.mubr.msk.bf16.mxu1 %vm1179_vm3, %v4162_v27  ;;  %2319 = vmatpush1.bf16.msra.mxu1 %v3562_v30  ;;  %v3567_v27 = vld [vmem:[%s4860_s5 + $0x4] ss:$8 sps:$4 sm:$0xff]  }
 0x226   : > { %2320 = vmatprep.subr.bf16.mxu1 %v3567_v27 }
 0x228   : > { %1967 = vmatmul.mubr.bf16.gmra.mxu0 %v4299_v5 }
 0x229   : > { %3226 = vmatprep.mubr.msk.bf16.mxu0 %vm1179_vm3, %v4305_v8  ;;  %2321 = vmatpush1.bf16.msra.mxu1 %v3565_v20 }
 0x22c   : > { %1706 = vmatmul.mubr.bf16.gmra.mxu1 %v4203_v59 }
 0x22d   : > { %3174 = vmatprep.mubr.msk.bf16.mxu1 %vm1179_vm3, %v4210_v61 }
 0x230   : > { %1975 = vmatmul.mubr.bf16.gmra.mxu0 %v4334_v34 }
 0x231   : > { %3227 = vmatprep.mubr.msk.bf16.mxu0 %vm1179_vm3, %v4339_v35 }
 0x234   : > { %1714 = vmatmul.mubr.bf16.gmra.mxu1 %v4255_v28 }
 0x235   : > { %3175 = vmatprep.mubr.msk.bf16.mxu1 %vm1179_vm3, %v4265_v18 }
 0x238   : > { %1983 = vmatmul.mubr.bf16.gmra.mxu0 %v1206_v2 }
 0x239   : > { %3228 = vmatprep.mubr.msk.bf16.mxu0 %vm1179_vm3, %v3970_v24 }
 0x23c   : > { %1722 = vmatmul.mubr.bf16.gmra.mxu1 %v4299_v5 }
 0x23d   : > { %3176 = vmatprep.mubr.msk.bf16.mxu1 %vm1179_vm3, %v4305_v8 }
 0x240   : > { %1991 = vmatmul.mubr.bf16.gmra.mxu0 %v4066_v16 }
 0x241   : > { %3229 = vmatprep.mubr.msk.bf16.mxu0 %vm1179_vm3, %v4071_v22 }
 0x244   : > { %1730 = vmatmul.mubr.bf16.gmra.mxu1 %v4334_v34 }
 0x245   : > { %3177 = vmatprep.mubr.msk.bf16.mxu1 %vm1179_vm3, %v4339_v35 }
 0x248   : > { %1999 = vmatmul.mubr.bf16.gmra.mxu0 %v4088_v33 }
 0x249   : > { %3230 = vmatprep.mubr.msk.bf16.mxu0 %vm1179_vm3, %v4093_v36 }
 0x24c   : > { %1738 = vmatmul.mubr.bf16.gmra.mxu1 %v1206_v2 }
 0x24d   : > { %3178 = vmatprep.mubr.msk.bf16.mxu1 %vm1179_vm3, %v3970_v24  ;;  %v1178_v24 = vpop.permute.xlu1 %1177 }
 0x250   : > { %2007 = vmatmul.mubr.bf16.gmra.mxu0 %v4110_v48 }
 0x251   : > { %3231 = vmatprep.mubr.msk.bf16.mxu0 %vm1179_vm3, %v4116_v49 }
 0x254   : > { %1746 = vmatmul.mubr.bf16.gmra.mxu1 %v4066_v16 }
 0x255   : > { %3179 = vmatprep.mubr.msk.bf16.mxu1 %vm1179_vm3, %v4071_v22  ;;  %v1250_v22 = vsel %vm1179_vm3, %v4388_v52, %v1178_v24 }
 0x258   : > { %2015 = vmatmul.mubr.bf16.gmra.mxu0 %v4134_v60 }
 0x259   : > { %3232 = vmatprep.mubr.msk.bf16.mxu0 %vm1179_vm3, %v4140_v62 }
 0x25c   : > { %1754 = vmatmul.mubr.bf16.gmra.mxu1 %v4088_v33 }
 0x25d   : > { %3180 = vmatprep.mubr.msk.bf16.mxu1 %vm1179_vm3, %v4093_v36 }
 0x260   : > { %2023 = vmatmul.mubr.bf16.gmra.mxu0 %v4179_v37 }
 0x261   : > { %3233 = vmatprep.mubr.msk.bf16.mxu0 %vm1179_vm3, %v4186_v42 }
 0x264   : > { %1762 = vmatmul.mubr.bf16.gmra.mxu1 %v4110_v48 }
 0x265   : > { %3181 = vmatprep.mubr.msk.bf16.mxu1 %vm1179_vm3, %v4116_v49 }
 0x268   : > { %2031 = vmatmul.mubr.bf16.gmra.mxu0 %v4229_v53 }
 0x269   : > { %3234 = vmatprep.mubr.msk.bf16.mxu0 %vm1179_vm3, %v4236_v41 }
 0x26c   : > { %1770 = vmatmul.mubr.bf16.gmra.mxu1 %v4134_v60 }
 0x26d   : > { %3182 = vmatprep.mubr.msk.bf16.mxu1 %vm1179_vm3, %v4140_v62 }
 0x270   : > { %2039 = vmatmul.mubr.bf16.gmra.mxu0 %v4279_v46 }
 0x271   : > { %3235 = vmatprep.mubr.msk.bf16.mxu0 %vm1179_vm3, %v4285_v58 }
 0x274   : > { %1778 = vmatmul.mubr.bf16.gmra.mxu1 %v4179_v37 }
 0x275   : > { %3183 = vmatprep.mubr.msk.bf16.mxu1 %vm1179_vm3, %v4186_v42 }
 0x278   : > { %2047 = vmatmul.mubr.bf16.gmra.mxu0 %v4317_v57 }
 0x279   : > { %3236 = vmatprep.mubr.msk.bf16.mxu0 %vm1179_vm3, %v4322_v19 }
 0x27c   : > { %1786 = vmatmul.mubr.bf16.gmra.mxu1 %v4229_v53 }
 0x27d   : > { %3184 = vmatprep.mubr.msk.bf16.mxu1 %vm1179_vm3, %v4236_v41 }
 0x280   : > { %2055 = vmatmul.mubr.bf16.gmra.mxu0 %v4350_v47 }
 0x281   : > { %3237 = vmatprep.mubr.msk.bf16.mxu0 %vm1179_vm3, %v4355_v0 }
 0x284   : > { %1794 = vmatmul.mubr.bf16.gmra.mxu1 %v4279_v46 }
 0x285   : > { %3185 = vmatprep.mubr.msk.bf16.mxu1 %vm1179_vm3, %v4285_v58 }
 0x288   : > { %2063 = vmatmul.mubr.bf16.gmra.mxu0 %v4381_v39 }
 0x289   : > { %3238 = vmatprep.mubr.msk.bf16.mxu0 %vm1179_vm3, %v4378_v29 }
 0x28c   : > { %v4497_v16 = vpop.f32.mrf.mxu1  ;;  %1802 = vmatmul.mubr.bf16.gmra.mxu1 %v4317_v57 }
 0x28d   : > { %3186 = vmatprep.mubr.msk.bf16.mxu1 %vm1179_vm3, %v4322_v19 }
 0x28e   : > { %v1505_v33 = vpop.f32.mrf.mxu1 }
 0x290   : > { %v4504_v36 = vpop.f32.mrf.mxu1  ;;  %2071 = vmatmul.mubr.bf16.gmra.mxu0 %v1250_v22 }
 0x292   : > { %v1508_v48 = vpop.f32.mrf.mxu1 }
 0x294   : > { %v4506_v49 = vpop.f32.mrf.mxu1  ;;  %1810 = vmatmul.mubr.bf16.gmra.mxu1 %v4350_v47 }
 0x295   : > { %2338 = vmatprep.mubr.bf16.mxu1 %v3646_v1 }
 0x296   : > { %v1513_v60 = vpop.f32.mrf.mxu1 }
 0x298   : > { %v4510_v62 = vpop.f32.mrf.mxu1 }
 0x29a   : > { %v1516_v37 = vpop.f32.mrf.mxu1 }
 0x29c   : > { %v4512_v42 = vpop.f32.mrf.mxu1 }
 0x29e   : > { %v1521_v59 = vpop.f32.mrf.mxu1 }
 0x2a0   : > { %v4514_v61 = vpop.f32.mrf.mxu1 }
 0x2a2   : > { %v1524_v53 = vpop.f32.mrf.mxu1 }
 0x2a4   : > { %v4516_v41 = vpop.f32.mrf.mxu1 }
 0x2a6   : > { %v1529_v28 = vpop.f32.mrf.mxu1 }
 0x2a8   : > { %v1455_v18 = vpop.f32.mrf.mxu0  ;;  %v4518_v46 = vpop.f32.mrf.mxu1 }
 0x2aa   : > { %v1457_v58 = vpop.f32.mrf.mxu0  ;;  %v1532_v5 = vpop.f32.mrf.mxu1 }
 0x2ac   : > { %v1458_v8 = vpop.f32.mrf.mxu0  ;;  %v4520_v57 = vpop.f32.mrf.mxu1 }
 0x2ae   : > { %v1460_v17 = vpop.f32.mrf.mxu0  ;;  %v1537_v19 = vpop.f32.mrf.mxu1 }
 0x2af   : > { %v4565_v17 = vld [vmem:[%s4859_s4] ss:$0 sm:$0xff] }
 0x2b0   : > { %v1463_v10 = vpop.f32.mrf.mxu0  ;;  %v4522_v21 = vpop.f32.mrf.mxu1 }
 0x2b2   : > { %v1465_v25 = vpop.f32.mrf.mxu0  ;;  %v1540_v13 = vpop.f32.mrf.mxu1 }
 0x2b4   : > { %v4524_v55 = vpop.f32.mrf.mxu0  ;;  %v4526_v31 = vpop.f32.mrf.mxu1 }
 0x2b6   : > { %v1468_v32 = vpop.f32.mrf.mxu0  ;;  %v1545_v34 = vpop.f32.mrf.mxu1 }
 0x2b8   : > { %v4528_v35 = vpop.f32.mrf.mxu0  ;;  %v4530_v40 = vpop.f32.mrf.mxu1 }
 0x2ba   : > { %v1473_v26 = vpop.f32.mrf.mxu0  ;;  %v1548_v3 = vpop.f32.mrf.mxu1 }
 0x2bc   : > { %v4532_v43 = vpop.f32.mrf.mxu0  ;;  %v4534_v44 = vpop.f32.mrf.mxu1 }
 0x2be   : > { %v1476_v45 = vpop.f32.mrf.mxu0  ;;  %v1553_v47 = vpop.f32.mrf.mxu1 }
 0x2c0   : > { %v4536_v56 = vpop.f32.mrf.mxu0  ;;  %v4538_v0 = vpop.f32.mrf.mxu1 }
 0x2c2   : > { %v1481_v51 = vpop.f32.mrf.mxu0  ;;  %v1556_v54 = vpop.f32.mrf.mxu1 }
 0x2c4   : > { %v4540_v15 = vpop.f32.mrf.mxu0  ;;  %v4542_v38 = vpop.f32.mrf.mxu1 }
 0x2c6   : > { %v1484_v2 = vpop.f32.mrf.mxu0  ;;  %v1561_v4 = vpop.f32.mrf.mxu1 }
 0x2c8   : > { %v4544_v11 = vpop.f32.mrf.mxu0  ;;  %v4546_v9 = vpop.f32.mrf.mxu1 }
 0x2ca   : > { %v1489_v6 = vpop.f32.mrf.mxu0  ;;  %v1564_v29 = vpop.f32.mrf.mxu1 }
 0x2cc   : > { %v4548_v39 = vpop.f32.mrf.mxu0  ;;  %v4550_v52 = vpop.f32.mrf.mxu1 }
 0x2ce   : > { %v1492_v63 = vpop.f32.mrf.mxu0  ;;  %v1569_v23 = vpop.f32.mrf.mxu1 }
 0x2d0   : > { %v4552_v14 = vpop.f32.mrf.mxu0  ;;  %v4554_v7 = vpop.f32.mrf.mxu1 }
 0x2d2   : > { %v1497_v12 = vpop.f32.mrf.mxu0  ;;  %v1572_v30 = vpop.f32.mrf.mxu1 }
 0x2d4   : > { %v4556_v50 = vpop.f32.mrf.mxu0  ;;  %v4558_v20 = vpop.f32.mrf.mxu1 }
 0x2d6   : > { %v1500_v27 = vpop.f32.mrf.mxu0  ;;  %v1577_v24 = vpop.f32.mrf.mxu1 }
 0x2d8   : > { %v4560_v22 = vpop.f32.mrf.mxu1  ;;  %v1952_v33 = vpop.f32.mrf.mxu0 }
 0x2da   : > { %v1580_v48 = vpop.f32.mrf.mxu1  ;;  %v1954_v60 = vpop.f32.mrf.mxu0 }
 0x2dc   : > { %v1691_v37 = vpop.f32.mrf.mxu1  ;;  %v1955_v59 = vpop.f32.mrf.mxu0 }
 0x2dd   : > { %v1692_v53 = vadd.f32 %v1691_v37, %v1455_v18 }
 0x2de   : > { %v1693_v28 = vpop.f32.mrf.mxu1  ;;  %v1957_v58 = vpop.f32.mrf.mxu0 }
 0x2df   : > { %v2079_v5 = vadd.f32 %v1952_v33, %v1692_v53 }
 0x2e0   : > { %v1694_v19 = vpop.f32.mrf.mxu1  ;;  %v1960_v25 = vpop.f32.mrf.mxu0 }
 0x2e1   : > { %v1695_v13 = vadd.f32 %v1694_v19, %v1458_v8  ;;  %v2118_v26 = vadd.f32 %v4565_v17, %v2079_v5 }
 0x2e2   : > { %v1696_v32 = vpop.f32.mrf.mxu1  ;;  %v1962_v34 = vpop.f32.mrf.mxu0 }
 0x2e3   : > { %v2080_v3 = vadd.f32 %v1955_v59, %v1695_v13  ;;  %v2150_v4 = vmax.f32 %v2118_v26, 0.0 }
 0x2e4   : > { %v1699_v45 = vpop.f32.mrf.mxu1  ;;  %v1963_v47 = vpop.f32.mrf.mxu0 }
 0x2e5   : > { %v2119_v18 = vadd.f32 %v4565_v17, %v2080_v3  ;;  %v1700_v51 = vadd.f32 %v1699_v45, %v1463_v10 }
 0x2e6   : > { %v1701_v54 = vpop.f32.mrf.mxu1  ;;  %v1965_v2 = vpop.f32.mrf.mxu0 }
 0x2e7   : > { %v2151_v6 = vmax.f32 %v2119_v18, 0.0  ;;  %v2081_v29 = vadd.f32 %v1960_v25, %v1700_v51 }
 0x2e8   : > { %v1702_v63 = vpop.f32.mrf.mxu1  ;;  %v1968_v23 = vpop.f32.mrf.mxu0 }
 0x2e9   : > { %v2182_v12 = vpack.c.bf16 %v2151_v6, %v2150_v4  ;;  %v1703_v8 = vadd.f32 %v1702_v63, %v4524_v55  ;;  %v2120_v24 = vadd.f32 %v4565_v17, %v2081_v29 }
 0x2ea   : > { %v1704_v30 = vpop.f32.mrf.mxu1  ;;  %v1970_v27 = vpop.f32.mrf.mxu0 }
 0x2eb   : > { %v2082_v33 = vadd.f32 %v1963_v47, %v1703_v8  ;;  %3248 = vmatmul.mubr.msk.bf16.vlgmr.msra.gmra.mxu1 %vm1179_vm3, %v2182_v12  ;;  %v2152_v28 = vmax.f32 %v2120_v24, 0.0 }
 0x2ec   : > { %v1707_v48 = vpop.f32.mrf.mxu1  ;;  %v1971_v60 = vpop.f32.mrf.mxu0  ;;  %2348 = vmatprep.mubr.bf16.mxu1 %v3646_v1 }
 0x2ed   : > { %v2121_v10 = vadd.f32 %v4565_v17, %v2082_v33  ;;  %v1708_v37 = vadd.f32 %v1707_v48, %v4528_v35 }
 0x2ee   : > { %v1709_v59 = vpop.f32.mrf.mxu1  ;;  %v1973_v53 = vpop.f32.mrf.mxu0 }
 0x2ef   : > { %v2153_v58 = vmax.f32 %v2121_v10, 0.0  ;;  %v2083_v55 = vadd.f32 %v1968_v23, %v1708_v37 }
 0x2f0   : > { %v1710_v5 = vpop.f32.mrf.mxu1  ;;  %v1976_v19 = vpop.f32.mrf.mxu0 }
 0x2f1   : > { %v2183_v25 = vpack.c.bf16 %v2153_v58, %v2152_v28  ;;  %v1711_v13 = vadd.f32 %v1710_v5, %v4532_v43  ;;  %v2122_v26 = vadd.f32 %v4565_v17, %v2083_v55 }
 0x2f2   : > { %v1712_v32 = vpop.f32.mrf.mxu1  ;;  %v1978_v34 = vpop.f32.mrf.mxu0 }
 0x2f3   : > { %v2084_v3 = vadd.f32 %v1971_v60, %v1711_v13  ;;  %3249 = vmatmul.mubr.msk.bf16.gmra.mxu1 %vm1179_vm3, %v2183_v25  ;;  %v2154_v2 = vmax.f32 %v2122_v26, 0.0 }
 0x2f4   : > { %v1715_v45 = vpop.f32.mrf.mxu1  ;;  %v1979_v47 = vpop.f32.mrf.mxu0  ;;  %2358 = vmatprep.mubr.bf16.mxu1 %v3646_v1 }
 0x2f5   : > { %v2123_v35 = vadd.f32 %v4565_v17, %v2084_v3  ;;  %v1716_v18 = vadd.f32 %v1715_v45, %v4536_v56 }
 0x2f6   : > { %v1717_v51 = vpop.f32.mrf.mxu1  ;;  %v1981_v54 = vpop.f32.mrf.mxu0 }
 0x2f7   : > { %v2155_v4 = vmax.f32 %v2123_v35, 0.0  ;;  %v2085_v43 = vadd.f32 %v1976_v19, %v1716_v18 }
 0x2f8   : > { %v1718_v6 = vpop.f32.mrf.mxu1  ;;  %v1984_v29 = vpop.f32.mrf.mxu0 }
 0x2f9   : > { %v2184_v63 = vpack.c.bf16 %v2155_v4, %v2154_v2  ;;  %v1719_v23 = vadd.f32 %v1718_v6, %v4540_v15  ;;  %v2124_v30 = vadd.f32 %v4565_v17, %v2085_v43 }
 0x2fa   : > { %v1720_v12 = vpop.f32.mrf.mxu1  ;;  %v1986_v8 = vpop.f32.mrf.mxu0 }
 0x2fb   : > { %v2086_v27 = vadd.f32 %v1979_v47, %v1719_v23  ;;  %3250 = vmatmul.mubr.msk.bf16.gmra.mxu1 %vm1179_vm3, %v2184_v63  ;;  %v2156_v37 = vmax.f32 %v2124_v30, 0.0 }
 0x2fc   : > { %v1723_v24 = vpop.f32.mrf.mxu1  ;;  %v1987_v33 = vpop.f32.mrf.mxu0  ;;  %2368 = vmatprep.mubr.bf16.mxu1 %v3646_v1 }
 0x2fd   : > { %v2125_v56 = vadd.f32 %v4565_v17, %v2086_v27  ;;  %v1724_v48 = vadd.f32 %v1723_v24, %v4544_v11 }
 0x2fe   : > { %v1725_v60 = vpop.f32.mrf.mxu1  ;;  %v1989_v10 = vpop.f32.mrf.mxu0 }
 0x2ff   : > { %v2157_v59 = vmax.f32 %v2125_v56, 0.0  ;;  %v2087_v15 = vadd.f32 %v1984_v29, %v1724_v48 }
 0x300   : > { %v1726_v53 = vpop.f32.mrf.mxu1  ;;  %v1992_v28 = vpop.f32.mrf.mxu0 }
 0x301   : > { %v2185_v58 = vpack.c.bf16 %v2157_v59, %v2156_v37  ;;  %v1727_v55 = vadd.f32 %v1726_v53, %v4548_v39  ;;  %v2126_v25 = vadd.f32 %v4565_v17, %v2087_v15 }
 0x302   : > { %v1728_v5 = vpop.f32.mrf.mxu1  ;;  %v1994_v19 = vpop.f32.mrf.mxu0 }
 0x303   : > { %v2088_v13 = vadd.f32 %v1987_v33, %v1727_v55  ;;  %3251 = vmatmul.mubr.msk.bf16.gmra.mxu1 %vm1179_vm3, %v2185_v58  ;;  %v2158_v47 = vmax.f32 %v2126_v25, 0.0 }
 0x304   : > { %v1731_v32 = vpop.f32.mrf.mxu1  ;;  %v1995_v34 = vpop.f32.mrf.mxu0  ;;  %2378 = vmatprep.mubr.bf16.mxu1 %v3646_v1 }
 0x305   : > { %v2127_v11 = vadd.f32 %v4565_v17, %v2088_v13  ;;  %v1732_v26 = vadd.f32 %v1731_v32, %v4552_v14 }
 0x306   : > { %v1733_v3 = vpop.f32.mrf.mxu1  ;;  %v1997_v45 = vpop.f32.mrf.mxu0 }
 0x307   : > { %v2159_v35 = vmax.f32 %v2127_v11, 0.0  ;;  %v2089_v39 = vadd.f32 %v1992_v28, %v1732_v26 }
 0x308   : > { %v1734_v18 = vpop.f32.mrf.mxu1  ;;  %v2000_v51 = vpop.f32.mrf.mxu0 }
 0x309   : > { %v2186_v54 = vpack.c.bf16 %v2159_v35, %v2158_v47  ;;  %v1735_v2 = vadd.f32 %v1734_v18, %v4556_v50  ;;  %v2128_v6 = vadd.f32 %v4565_v17, %v2089_v39 }
 0x30a   : > { %v1736_v4 = vpop.f32.mrf.mxu1  ;;  %v2002_v43 = vpop.f32.mrf.mxu0 }
 0x30b   : > { %v2090_v29 = vadd.f32 %v1995_v34, %v1735_v2  ;;  %3252 = vmatmul.mubr.msk.bf16.gmra.mxu1 %vm1179_vm3, %v2186_v54  ;;  %v2160_v27 = vmax.f32 %v2128_v6, 0.0 }
 0x30c   : > { %v1739_v63 = vpop.f32.mrf.mxu1  ;;  %v2003_v23 = vpop.f32.mrf.mxu0  ;;  %2388 = vmatprep.mubr.bf16.mxu1 %v3646_v1 }
 0x30d   : > { %v2129_v14 = vadd.f32 %v4565_v17, %v2090_v29  ;;  %v1740_v12 = vadd.f32 %v1739_v63, %v4497_v16 }
 0x30e   : > { %v1741_v8 = vpop.f32.mrf.mxu1  ;;  %v2005_v30 = vpop.f32.mrf.mxu0 }
 0x30f   : > { %v2161_v24 = vmax.f32 %v2129_v14, 0.0  ;;  %v2091_v50 = vadd.f32 %v2000_v51, %v1740_v12 }
 0x310   : > { %v1742_v33 = vpop.f32.mrf.mxu1  ;;  %v2008_v56 = vpop.f32.mrf.mxu0 }
 0x311   : > { %v2187_v48 = vpack.c.bf16 %v2161_v24, %v2160_v27  ;;  %v1743_v60 = vadd.f32 %v1742_v33, %v4504_v36  ;;  %v2130_v59 = vadd.f32 %v4565_v17, %v2091_v50 }
 0x312   : > { %v1744_v10 = vpop.f32.mrf.mxu1  ;;  %v2010_v37 = vpop.f32.mrf.mxu0 }
 0x313   : > { %v2092_v15 = vadd.f32 %v2003_v23, %v1743_v60  ;;  %3253 = vmatmul.mubr.msk.bf16.gmra.mxu1 %vm1179_vm3, %v2187_v48  ;;  %v2162_v19 = vmax.f32 %v2130_v59, 0.0 }
 0x314   : > { %v1747_v53 = vpop.f32.mrf.mxu1  ;;  %v2011_v28 = vpop.f32.mrf.mxu0  ;;  %2398 = vmatprep.mubr.bf16.mxu1 %v3646_v1 }
 0x315   : > { %v2131_v16 = vadd.f32 %v4565_v17, %v2092_v15  ;;  %v1748_v58 = vadd.f32 %v1747_v53, %v4506_v49 }
 0x316   : > { %v1749_v55 = vpop.f32.mrf.mxu1  ;;  %v2013_v5 = vpop.f32.mrf.mxu0 }
 0x317   : > { %v2163_v25 = vmax.f32 %v2131_v16, 0.0  ;;  %v2093_v36 = vadd.f32 %v2008_v56, %v1748_v58 }
 0x318   : > { %v1750_v13 = vpop.f32.mrf.mxu1  ;;  %v2016_v32 = vpop.f32.mrf.mxu0 }
 0x319   : > { %v2188_v34 = vpack.c.bf16 %v2163_v25, %v2162_v19  ;;  %v1751_v11 = vadd.f32 %v1750_v13, %v4510_v62  ;;  %v2132_v45 = vadd.f32 %v4565_v17, %v2093_v36 }
 0x31a   : > { %v1752_v26 = vpop.f32.mrf.mxu1  ;;  %v2018_v3 = vpop.f32.mrf.mxu0 }
 0x31b   : > { %v2094_v47 = vadd.f32 %v2011_v28, %v1751_v11  ;;  %3254 = vmatmul.mubr.msk.bf16.gmra.mxu1 %vm1179_vm3, %v2188_v34  ;;  %v2164_v2 = vmax.f32 %v2132_v45, 0.0 }
 0x31c   : > { %v1755_v35 = vpop.f32.mrf.mxu1  ;;  %v2019_v39 = vpop.f32.mrf.mxu0  ;;  %2408 = vmatprep.mubr.bf16.mxu1 %v3646_v1 }
 0x31d   : > { %v2133_v49 = vadd.f32 %v4565_v17, %v2094_v47  ;;  %v1756_v18 = vadd.f32 %v1755_v35, %v4512_v42 }
 0x31e   : > { %v1757_v51 = vpop.f32.mrf.mxu1  ;;  %v2021_v54 = vpop.f32.mrf.mxu0 }
 0x31f   : > { %v2165_v4 = vmax.f32 %v2133_v49, 0.0  ;;  %v2095_v62 = vadd.f32 %v2016_v32, %v1756_v18 }
 0x320   : > { %v1758_v43 = vpop.f32.mrf.mxu1  ;;  %v2024_v6 = vpop.f32.mrf.mxu0 }
 0x321   : > { %v2189_v29 = vpack.c.bf16 %v2165_v4, %v2164_v2  ;;  %v1759_v63 = vadd.f32 %v1758_v43, %v4514_v61  ;;  %v2134_v12 = vadd.f32 %v4565_v17, %v2095_v62 }
 0x322   : > { %v1760_v23 = vpop.f32.mrf.mxu1  ;;  %v2026_v14 = vpop.f32.mrf.mxu0 }
 0x323   : > { %v2096_v8 = vadd.f32 %v2019_v39, %v1759_v63  ;;  %3255 = vmatmul.mubr.msk.bf16.gmra.mxu1 %vm1179_vm3, %v2189_v29  ;;  %v2166_v56 = vmax.f32 %v2134_v12, 0.0 }
 0x324   : > { %v1763_v30 = vpop.f32.mrf.mxu1  ;;  %v2027_v27 = vpop.f32.mrf.mxu0  ;;  %2418 = vmatprep.mubr.bf16.mxu1 %v3646_v1 }
 0x325   : > { %v2135_v42 = vadd.f32 %v4565_v17, %v2096_v8  ;;  %v1764_v24 = vadd.f32 %v1763_v30, %v4516_v41 }
 0x326   : > { %v1765_v50 = vpop.f32.mrf.mxu1  ;;  %v2029_v33 = vpop.f32.mrf.mxu0 }
 0x327   : > { %v2167_v48 = vmax.f32 %v2135_v42, 0.0  ;;  %v2097_v61 = vadd.f32 %v2024_v6, %v1764_v24 }
 0x328   : > { %v1766_v60 = vpop.f32.mrf.mxu1  ;;  %v2032_v10 = vpop.f32.mrf.mxu0 }
 0x329   : > { %v2190_v37 = vpack.c.bf16 %v2167_v48, %v2166_v56  ;;  %v1767_v59 = vadd.f32 %v1766_v60, %v4518_v46  ;;  %v2136_v28 = vadd.f32 %v4565_v17, %v2097_v61 }
 0x32a   : > { %v1768_v15 = vpop.f32.mrf.mxu1  ;;  %v2034_v53 = vpop.f32.mrf.mxu0 }
 0x32b   : > { %v2098_v16 = vadd.f32 %v2027_v27, %v1767_v59  ;;  %3256 = vmatmul.mubr.msk.bf16.gmra.mxu1 %vm1179_vm3, %v2190_v37  ;;  %v2168_v36 = vmax.f32 %v2136_v28, 0.0 }
 0x32c   : > { %v1771_v58 = vpop.f32.mrf.mxu1  ;;  %v2035_v55 = vpop.f32.mrf.mxu0  ;;  %2428 = vmatprep.mubr.bf16.mxu1 %v3646_v1 }
 0x32d   : > { %v2137_v41 = vadd.f32 %v4565_v17, %v2098_v16  ;;  %v1772_v5 = vadd.f32 %v1771_v58, %v4520_v57 }
 0x32e   : > { %v1773_v19 = vpop.f32.mrf.mxu1  ;;  %v2037_v25 = vpop.f32.mrf.mxu0 }
 0x32f   : > { %v2169_v13 = vmax.f32 %v2137_v41, 0.0  ;;  %v2099_v46 = vadd.f32 %v2032_v10, %v1772_v5 }
 0x330   : > { %v1774_v32 = vpop.f32.mrf.mxu1  ;;  %v2040_v34 = vpop.f32.mrf.mxu0 }
 0x331   : > { %v2191_v11 = vpack.c.bf16 %v2169_v13, %v2168_v36  ;;  %v1775_v26 = vadd.f32 %v1774_v32, %v4522_v21  ;;  %v2138_v47 = vadd.f32 %v4565_v17, %v2099_v46 }
 0x332   : > { %v1776_v3 = vpop.f32.mrf.mxu1  ;;  %v2042_v45 = vpop.f32.mrf.mxu0 }
 0x333   : > { %v2100_v35 = vadd.f32 %v2035_v55, %v1775_v26  ;;  %3257 = vmatmul.mubr.msk.bf16.gmra.mxu1 %vm1179_vm3, %v2191_v11  ;;  %v2170_v2 = vmax.f32 %v2138_v47, 0.0 }
 0x334   : > { %v1779_v39 = vpop.f32.mrf.mxu1  ;;  %v2043_v49 = vpop.f32.mrf.mxu0  ;;  %2438 = vmatprep.mubr.bf16.mxu1 %v3646_v1 }
 0x335   : > { %v2139_v57 = vadd.f32 %v4565_v17, %v2100_v35  ;;  %v1780_v18 = vadd.f32 %v1779_v39, %v4526_v31 }
 0x336   : > { %v1781_v51 = vpop.f32.mrf.mxu1  ;;  %v2045_v54 = vpop.f32.mrf.mxu0 }
 0x337   : > { %v2171_v4 = vmax.f32 %v2139_v57, 0.0  ;;  %v2101_v21 = vadd.f32 %v2040_v34, %v1780_v18 }
 0x338   : > { %v1782_v62 = vpop.f32.mrf.mxu1  ;;  %v2048_v43 = vpop.f32.mrf.mxu0 }
 0x339   : > { %v2192_v6 = vpack.c.bf16 %v2171_v4, %v2170_v2  ;;  %v1783_v29 = vadd.f32 %v1782_v62, %v4530_v40  ;;  %v2140_v14 = vadd.f32 %v4565_v17, %v2101_v21 }
 0x33a   : > { %v1784_v63 = vpop.f32.mrf.mxu1  ;;  %v2050_v23 = vpop.f32.mrf.mxu0 }
 0x33b   : > { %v2102_v12 = vadd.f32 %v2043_v49, %v1783_v29  ;;  %3258 = vmatmul.mubr.msk.bf16.gmra.mxu1 %vm1179_vm3, %v2192_v6  ;;  %v2172_v50 = vmax.f32 %v2140_v14, 0.0 }
 0x33c   : > { %v1787_v8 = vpop.f32.mrf.mxu1  ;;  %v2051_v30 = vpop.f32.mrf.mxu0  ;;  %2448 = vmatprep.mubr.bf16.mxu1 %v3646_v1 }
 0x33d   : > { %v2141_v31 = vadd.f32 %v4565_v17, %v2102_v12  ;;  %v1788_v27 = vadd.f32 %v1787_v8, %v4534_v44 }
 0x33e   : > { %v1789_v42 = vpop.f32.mrf.mxu1  ;;  %v2053_v24 = vpop.f32.mrf.mxu0 }
 0x33f   : > { %v2173_v33 = vmax.f32 %v2141_v31, 0.0  ;;  %v2103_v40 = vadd.f32 %v2048_v43, %v1788_v27 }
 0x340   : > { %v1790_v56 = vpop.f32.mrf.mxu1  ;;  %v2056_v48 = vpop.f32.mrf.mxu0 }
 0x341   : > { %v2193_v61 = vpack.c.bf16 %v2173_v33, %v2172_v50  ;;  %v1791_v60 = vadd.f32 %v1790_v56, %v4538_v0  ;;  %v2142_v59 = vadd.f32 %v4565_v17, %v2103_v40  ;;  %v2208_v56 = vlaneseq }
 0x342   : > { %v1792_v10 = vpop.f32.mrf.mxu1  ;;  %v2058_v37 = vpop.f32.mrf.mxu0 }
 0x343   : > { %v2104_v15 = vadd.f32 %v2051_v30, %v1791_v60  ;;  %3259 = vmatmul.mubr.msk.bf16.gmra.mxu1 %vm1179_vm3, %v2193_v61  ;;  %v2174_v41 = vmax.f32 %v2142_v59, 0.0  ;;  %v2206_v61 = vld [vmem:[%s4861_s6] sm:$0x3] }
 0x344   : > { %v1795_v53 = vpop.f32.mrf.mxu1  ;;  %v2059_v28 = vpop.f32.mrf.mxu0  ;;  %2458 = vmatprep.mubr.bf16.mxu1 %v3646_v1 }
 0x345   : > { %v2143_v44 = vadd.f32 %v4565_v17, %v2104_v15  ;;  %v1796_v16 = vadd.f32 %v1795_v53, %v4542_v38  ;;  %v3265_v15 = vld [vmem:[%s3771_s16 + $0x18] sm:$0xff] }
 0x346   : > { %v1797_v58 = vpop.f32.mrf.mxu1  ;;  %v2061_v55 = vpop.f32.mrf.mxu0 }
 0x347   : > { %v2175_v5 = vmax.f32 %v2143_v44, 0.0  ;;  %v2105_v0 = vadd.f32 %v2056_v48, %v1796_v16  ;;  %v2537_v55 = vunpack.c.l.bf16 %v3265_v15 }
 0x348   : > { %v1798_v19 = vpop.f32.mrf.mxu1  ;;  %v2064_v25 = vpop.f32.mrf.mxu0 }
 0x349   : > { %v2194_v36 = vpack.c.bf16 %v2175_v5, %v2174_v41  ;;  %v1799_v13 = vadd.f32 %v1798_v19, %v4546_v9  ;;  %v2144_v34 = vadd.f32 %v4565_v17, %v2105_v0  ;;  %v3266_v41 = vld [vmem:[%s3771_s16 + $0x20] sm:$0xff] }
 0x34a   : > { %v1800_v46 = vpop.f32.mrf.mxu1  ;;  %v2066_v32 = vpop.f32.mrf.mxu0 }
 0x34b   : > { %v2106_v11 = vadd.f32 %v2059_v28, %v1799_v13  ;;  %3260 = vmatmul.mubr.msk.bf16.gmra.mxu1 %vm1179_vm3, %v2194_v36  ;;  %v2176_v39 = vmax.f32 %v2144_v34, 0.0  ;;  %v2539_v13 = vunpack.c.l.bf16 %v3266_v41 }
 0x34c   : > { %v1803_v26 = vpop.f32.mrf.mxu1  ;;  %v2067_v3 = vpop.f32.mrf.mxu0  ;;  %2468 = vmatprep.mubr.bf16.mxu1 %v3646_v1 }
 0x34d   : > { %v2145_v38 = vadd.f32 %v4565_v17, %v2106_v11  ;;  %v1804_v45 = vadd.f32 %v1803_v26, %v4550_v52  ;;  %v3267_v26 = vld [vmem:[%s3771_s16 + $0x28] sm:$0xff] }
 0x34e   : > { %v1805_v47 = vpop.f32.mrf.mxu1  ;;  %v2069_v35 = vpop.f32.mrf.mxu0 }
 0x34f   : > { %v2177_v49 = vmax.f32 %v2145_v38, 0.0  ;;  %v2107_v9 = vadd.f32 %v2064_v25, %v1804_v45  ;;  %v2538_v25 = vunpack.c.h.bf16 %v3265_v15  ;;  %v2540_v35 = vunpack.c.h.bf16 %v3266_v41 }
 0x350   : > { %v1806_v57 = vpop.f32.mrf.mxu1  ;;  %v2072_v18 = vpop.f32.mrf.mxu0 }
 0x351   : > { %v2195_v51 = vpack.c.bf16 %v2177_v49, %v2176_v39  ;;  %v1807_v54 = vadd.f32 %v1806_v57, %v4554_v7  ;;  %v2146_v21 = vadd.f32 %v4565_v17, %v2107_v9  ;;  %v2541_v49 = vunpack.c.l.bf16 %v3267_v26 }
 0x352   : > { %v1808_v2 = vpop.f32.mrf.mxu1  ;;  %v2074_v4 = vpop.f32.mrf.mxu0 }
 0x353   : > { %v2108_v62 = vadd.f32 %v2067_v3, %v1807_v54  ;;  %3261 = vmatmul.mubr.msk.bf16.gmra.mxu1 %vm1179_vm3, %v2195_v51  ;;  %v2178_v14 = vmax.f32 %v2146_v21, 0.0  ;;  %v3268_v54 = vld [vmem:[%s3771_s16 + $0x30] sm:$0xff] }
 0x354   : > { %v1811_v43 = vpop.f32.mrf.mxu1  ;;  %v2075_v6 = vpop.f32.mrf.mxu0  ;;  %2478 = vmatprep.mubr.bf16.mxu1 %v3646_v1 }
 0x355   : > { %v2147_v52 = vadd.f32 %v4565_v17, %v2108_v62  ;;  %v1812_v29 = vadd.f32 %v1811_v43, %v4558_v20  ;;  %v2542_v43 = vunpack.c.h.bf16 %v3267_v26 }
 0x356   : > { %v1813_v63 = vpop.f32.mrf.mxu1  ;;  %v2077_v23 = vpop.f32.mrf.mxu0 }
 0x357   : > { %v2179_v12 = vmax.f32 %v2147_v52, 0.0  ;;  %v2109_v7 = vadd.f32 %v2072_v18, %v1812_v29  ;;  %v2543_v52 = vunpack.c.l.bf16 %v3268_v54 }
 0x358   : > { %v1814_v8 = vpop.f32.mrf.mxu1 }
 0x359   : > { %v2196_v30 = vpack.c.bf16 %v2179_v12, %v2178_v14  ;;  %v1815_v31 = vadd.f32 %v1814_v8, %v4560_v22  ;;  %v2148_v42 = vadd.f32 %v4565_v17, %v2109_v7  ;;  %v2209_v22 = vshrl.u32 %v2208_v56, 7  ;;  %v3269_v12 = vld [vmem:[%s3771_s16 + $0x38] sm:$0xff]  ;;  %v3270_v56 = vld [vmem:[%s3771_s16 + $0x40] sm:$0xff] }
 0x35a   : > { %v1816_v27 = vpop.f32.mrf.mxu1 }
 0x35b   : > { %v2110_v24 = vadd.f32 %v2075_v6, %v1815_v31  ;;  %3262 = vmatmul.mubr.msk.bf16.gmra.mxu1 %vm1179_vm3, %v2196_v30  ;;  %v2180_v50 = vmax.f32 %v2148_v42, 0.0  ;;  %v2210_v48 = vsub.s32 0, %v2209_v22  ;;  %v2214_v60 = vsub.s32 1, %v2209_v22 }
 0x35c   : > { %2488 = vmatprep.mubr.bf16.mxu1 %v3646_v1  ;;  %v3264_v1 = vld [vmem:[%s3771_s16 + $0x10] sm:$0xff]  ;;  %v2544_v27 = vunpack.c.h.bf16 %v3268_v54 }
 0x35d   : > { %v2149_v20 = vadd.f32 %v4565_v17, %v2110_v24  ;;  %v4663_v10 = vrot.slane %v2206_v61, %v2210_v48  ;;  %v2535_v17 = vunpack.c.l.bf16 %v3264_v1  ;;  %v4665_v37 = vrot.slane %v2206_v61, %v2214_v60 }
 0x35e   : > { %v2536_v28 = vunpack.c.h.bf16 %v3264_v1  ;;  %v2545_v24 = vunpack.c.l.bf16 %v3269_v12  ;;  %v2546_v1 = vunpack.c.h.bf16 %v3269_v12 }
 0x35f   : > { %v2181_v33 = vmax.f32 %v2149_v20, 0.0 }
 0x361   : > { %v2197_v40 = vpack.c.bf16 %v2181_v33, %v2180_v50 }
 0x363   : > { %3263 = vmatmul.mubr.msk.bf16.gmra.mxu1 %vm1179_vm3, %v2197_v40 }
 0x3ab   : > { %v2340_v59 = vpop.f32.mrf.mxu1 }
 0x3ac   : > { %v2341_v53 = vadd.f32 %v2340_v59, %v4663_v10  ;;  %v2547_v59 = vunpack.c.l.bf16 %v3270_v56 }
 0x3ad   : > { %v2342_v44 = vpop.f32.mrf.mxu1 }
 0x3ae   : > { %v2599_v16 = vadd.f32 %v2535_v17, %v2341_v53  ;;  %v2343_v58 = vadd.f32 %v2342_v44, %v4665_v37 }
 0x3af   : > { %v2344_v5 = vpop.f32.mrf.mxu1 }
 0x3b0   : > { %v2600_v0 = vadd.f32 %v2536_v28, %v2343_v58  ;;  %v2345_v19 = vadd.f32 %v2344_v5, %v4663_v10  ;;  %v2663_v46 = vmax.f32 %v2599_v16, 0.0  ;;  %v3271_v16 = vld [vmem:[%s3771_s16 + $0x48] sm:$0xff] }
 0x3b1   : > { %v2346_v36 = vpop.f32.mrf.mxu1 }
 0x3b2   : > { %v2664_v32 = vmax.f32 %v2600_v0, 0.0  ;;  %v2601_v34 = vadd.f32 %v2537_v55, %v2345_v19  ;;  %v2347_v11 = vadd.f32 %v2346_v36, %v4665_v37  ;;  %v2548_v0 = vunpack.c.h.bf16 %v3270_v56 }
 0x3b3   : > { %v2350_v3 = vpop.f32.mrf.mxu1 }
 0x3b4   : > { %v3333_v38 = vpack.c.bf16 %v2664_v32, %v2663_v46  ;;  %v2602_v45 = vadd.f32 %v2538_v25, %v2347_v11  ;;  %v2351_v47 = vadd.f32 %v2350_v3, %v4663_v10  ;;  %v2665_v9 = vmax.f32 %v2601_v34, 0.0  ;;  %v3272_v34 = vld [vmem:[%s3771_s16 + $0x50] sm:$0xff] }
 0x3b5   : > { %v2352_v39 = vpop.f32.mrf.mxu1  ;;  %v2549_v25 = vunpack.c.l.bf16 %v3271_v16 }
 0x3b6   : > { %2919 = vst [vmem:[%s4678_s15] sm:$0xff] %v3333_v38  ;;  %v2666_v57 = vmax.f32 %v2602_v45, 0.0  ;;  %v2603_v18 = vadd.f32 %v2539_v13, %v2351_v47  ;;  %v2353_v51 = vadd.f32 %v2352_v39, %v4665_v37  ;;  %v2550_v45 = vunpack.c.h.bf16 %v3271_v16 }
 0x3b7   : > { %v2354_v2 = vpop.f32.mrf.mxu1 }
 0x3b8   : > { %v3334_v4 = vpack.c.bf16 %v2666_v57, %v2665_v9  ;;  %v2604_v21 = vadd.f32 %v2540_v35, %v2353_v51  ;;  %v2355_v62 = vadd.f32 %v2354_v2, %v4663_v10  ;;  %v2667_v29 = vmax.f32 %v2603_v18, 0.0  ;;  %v3273_v18 = vld [vmem:[%s3771_s16 + $0x58] sm:$0xff] }
 0x3b9   : > { %v2356_v6 = vpop.f32.mrf.mxu1  ;;  %v2551_v35 = vunpack.c.l.bf16 %v3272_v34 }
 0x3ba   : > { %2920 = vst [vmem:[%s4678_s15 + $0x8] sm:$0xff] %v3334_v4  ;;  %v2668_v63 = vmax.f32 %v2604_v21, 0.0  ;;  %v2605_v23 = vadd.f32 %v2541_v49, %v2355_v62  ;;  %v2357_v14 = vadd.f32 %v2356_v6, %v4665_v37  ;;  %v2552_v21 = vunpack.c.h.bf16 %v3272_v34 }
 0x3bb   : > { %v2360_v7 = vpop.f32.mrf.mxu1 }
 0x3bc   : > { %v3335_v8 = vpack.c.bf16 %v2668_v63, %v2667_v29  ;;  %v2606_v30 = vadd.f32 %v2542_v43, %v2357_v14  ;;  %v2361_v31 = vadd.f32 %v2360_v7, %v4663_v10  ;;  %v2669_v20 = vmax.f32 %v2605_v23, 0.0  ;;  %v3274_v23 = vld [vmem:[%s3771_s16 + $0x60] sm:$0xff] }
 0x3bd   : > { %v2362_v42 = vpop.f32.mrf.mxu1  ;;  %v2553_v43 = vunpack.c.l.bf16 %v3273_v18 }
 0x3be   : > { %2921 = vst [vmem:[%s4678_s15 + $0x10] sm:$0xff] %v3335_v8  ;;  %v2670_v50 = vmax.f32 %v2606_v30, 0.0  ;;  %v2607_v33 = vadd.f32 %v2543_v52, %v2361_v31  ;;  %v2363_v40 = vadd.f32 %v2362_v42, %v4665_v37  ;;  %v2554_v30 = vunpack.c.h.bf16 %v3273_v18 }
 0x3bf   : > { %v2364_v22 = vpop.f32.mrf.mxu1 }
 0x3c0   : > { %v3336_v48 = vpack.c.bf16 %v2670_v50, %v2669_v20  ;;  %v2608_v61 = vadd.f32 %v2544_v27, %v2363_v40  ;;  %v2365_v60 = vadd.f32 %v2364_v22, %v4663_v10  ;;  %v2671_v15 = vmax.f32 %v2607_v33, 0.0  ;;  %v3275_v33 = vld [vmem:[%s3771_s16 + $0x68] sm:$0xff] }
 0x3c1   : > { %v2366_v17 = vpop.f32.mrf.mxu1  ;;  %v2555_v27 = vunpack.c.l.bf16 %v3274_v23 }
 0x3c2   : > { %2922 = vst [vmem:[%s4678_s15 + $0x18] sm:$0xff] %v3336_v48  ;;  %v2672_v53 = vmax.f32 %v2608_v61, 0.0  ;;  %v2609_v28 = vadd.f32 %v2545_v24, %v2365_v60  ;;  %v2367_v44 = vadd.f32 %v2366_v17, %v4665_v37  ;;  %v2556_v61 = vunpack.c.h.bf16 %v3274_v23 }
 0x3c3   : > { %v2370_v58 = vpop.f32.mrf.mxu1 }
 0x3c4   : > { %v3337_v55 = vpack.c.bf16 %v2672_v53, %v2671_v15  ;;  %v2610_v41 = vadd.f32 %v2546_v1, %v2367_v44  ;;  %v2371_v5 = vadd.f32 %v2370_v58, %v4663_v10  ;;  %v2673_v36 = vmax.f32 %v2609_v28, 0.0  ;;  %v3276_v28 = vld [vmem:[%s3771_s16 + $0x70] sm:$0xff] }
 0x3c5   : > { %v2372_v19 = vpop.f32.mrf.mxu1  ;;  %v2557_v1 = vunpack.c.l.bf16 %v3275_v33 }
 0x3c6   : > { %2923 = vst [vmem:[%s4678_s15 + $0x20] sm:$0xff] %v3337_v55  ;;  %v2674_v13 = vmax.f32 %v2610_v41, 0.0  ;;  %v2611_v46 = vadd.f32 %v2547_v59, %v2371_v5  ;;  %v2373_v32 = vadd.f32 %v2372_v19, %v4665_v37  ;;  %v2558_v41 = vunpack.c.h.bf16 %v3275_v33 }
 0x3c7   : > { %v2374_v11 = vpop.f32.mrf.mxu1 }
 0x3c8   : > { %v3338_v26 = vpack.c.bf16 %v2674_v13, %v2673_v36  ;;  %v2612_v3 = vadd.f32 %v2548_v0, %v2373_v32  ;;  %v2375_v38 = vadd.f32 %v2374_v11, %v4663_v10  ;;  %v2675_v39 = vmax.f32 %v2611_v46, 0.0  ;;  %v3277_v46 = vld [vmem:[%s3771_s16 + $0x78] sm:$0xff] }
 0x3c9   : > { %v2376_v47 = vpop.f32.mrf.mxu1  ;;  %v2559_v0 = vunpack.c.l.bf16 %v3276_v28 }
 0x3ca   : > { %2924 = vst [vmem:[%s4678_s15 + $0x28] sm:$0xff] %v3338_v26  ;;  %v2676_v49 = vmax.f32 %v2612_v3, 0.0  ;;  %v2613_v9 = vadd.f32 %v2549_v25, %v2375_v38  ;;  %v2377_v57 = vadd.f32 %v2376_v47, %v4665_v37  ;;  %v2560_v3 = vunpack.c.h.bf16 %v3276_v28 }
 0x3cb   : > { %v2380_v51 = vpop.f32.mrf.mxu1 }
 0x3cc   : > { %v3339_v54 = vpack.c.bf16 %v2676_v49, %v2675_v39  ;;  %v2614_v2 = vadd.f32 %v2550_v45, %v2377_v57  ;;  %v2381_v4 = vadd.f32 %v2380_v51, %v4663_v10  ;;  %v2677_v6 = vmax.f32 %v2613_v9, 0.0  ;;  %v3278_v9 = vld [vmem:[%s3771_s16 + $0x80] sm:$0xff] }
 0x3cd   : > { %v2382_v62 = vpop.f32.mrf.mxu1  ;;  %v2561_v45 = vunpack.c.l.bf16 %v3277_v46 }
 0x3ce   : > { %2925 = vst [vmem:[%s4678_s15 + $0x30] sm:$0xff] %v3339_v54  ;;  %v2678_v52 = vmax.f32 %v2614_v2, 0.0  ;;  %v2615_v29 = vadd.f32 %v2551_v35, %v2381_v4  ;;  %v2383_v63 = vadd.f32 %v2382_v62, %v4665_v37  ;;  %v2562_v2 = vunpack.c.h.bf16 %v3277_v46 }
 0x3cf   : > { %v2384_v14 = vpop.f32.mrf.mxu1 }
 0x3d0   : > { %v3340_v12 = vpack.c.bf16 %v2678_v52, %v2677_v6  ;;  %v2616_v7 = vadd.f32 %v2552_v21, %v2383_v63  ;;  %v2385_v8 = vadd.f32 %v2384_v14, %v4663_v10  ;;  %v2679_v42 = vmax.f32 %v2615_v29, 0.0  ;;  %v3279_v29 = vld [vmem:[%s3771_s16 + $0x88] sm:$0xff] }
 0x3d1   : > { %v2386_v31 = vpop.f32.mrf.mxu1  ;;  %v2563_v21 = vunpack.c.l.bf16 %v3278_v9 }
 0x3d2   : > { %2926 = vst [vmem:[%s4678_s15 + $0x38] sm:$0xff] %v3340_v12  ;;  %v2680_v24 = vmax.f32 %v2616_v7, 0.0  ;;  %v2617_v20 = vadd.f32 %v2553_v43, %v2385_v8  ;;  %v2387_v50 = vadd.f32 %v2386_v31, %v4665_v37  ;;  %v2564_v7 = vunpack.c.h.bf16 %v3278_v9 }
 0x3d3   : > { %v2390_v40 = vpop.f32.mrf.mxu1 }
 0x3d4   : > { %v3341_v56 = vpack.c.bf16 %v2680_v24, %v2679_v42  ;;  %v2618_v22 = vadd.f32 %v2554_v30, %v2387_v50  ;;  %v2391_v48 = vadd.f32 %v2390_v40, %v4663_v10  ;;  %v2681_v17 = vmax.f32 %v2617_v20, 0.0  ;;  %v3280_v20 = vld [vmem:[%s3771_s16 + $0x90] sm:$0xff] }
 0x3d5   : > { %v2392_v60 = vpop.f32.mrf.mxu1  ;;  %v2565_v30 = vunpack.c.l.bf16 %v3279_v29 }
 0x3d6   : > { %2927 = vst [vmem:[%s4678_s15 + $0x40] sm:$0xff] %v3341_v56  ;;  %v2682_v59 = vmax.f32 %v2618_v22, 0.0  ;;  %v2619_v15 = vadd.f32 %v2555_v27, %v2391_v48  ;;  %v2393_v53 = vadd.f32 %v2392_v60, %v4665_v37  ;;  %v2566_v22 = vunpack.c.h.bf16 %v3279_v29 }
 0x3d7   : > { %v2394_v44 = vpop.f32.mrf.mxu1 }
 0x3d8   : > { %v3342_v16 = vpack.c.bf16 %v2682_v59, %v2681_v17  ;;  %v2620_v58 = vadd.f32 %v2556_v61, %v2393_v53  ;;  %v2395_v55 = vadd.f32 %v2394_v44, %v4663_v10  ;;  %v2683_v19 = vmax.f32 %v2619_v15, 0.0  ;;  %v3281_v15 = vld [vmem:[%s3771_s16 + $0x98] sm:$0xff] }
 0x3d9   : > { %v2396_v5 = vpop.f32.mrf.mxu1  ;;  %v2567_v61 = vunpack.c.l.bf16 %v3280_v20 }
 0x3da   : > { %2928 = vst [vmem:[%s4678_s15 + $0x48] sm:$0xff] %v3342_v16  ;;  %v2684_v25 = vmax.f32 %v2620_v58, 0.0  ;;  %v2621_v36 = vadd.f32 %v2557_v1, %v2395_v55  ;;  %v2397_v13 = vadd.f32 %v2396_v5, %v4665_v37  ;;  %v2568_v58 = vunpack.c.h.bf16 %v3280_v20 }
 0x3db   : > { %v2400_v32 = vpop.f32.mrf.mxu1 }
 0x3dc   : > { %v3343_v34 = vpack.c.bf16 %v2684_v25, %v2683_v19  ;;  %v2622_v11 = vadd.f32 %v2558_v41, %v2397_v13  ;;  %v2401_v26 = vadd.f32 %v2400_v32, %v4663_v10  ;;  %v2685_v47 = vmax.f32 %v2621_v36, 0.0  ;;  %v3282_v36 = vld [vmem:[%s3771_s16 + $0xa0] sm:$0xff] }
 0x3dd   : > { %v2402_v38 = vpop.f32.mrf.mxu1  ;;  %v2569_v41 = vunpack.c.l.bf16 %v3281_v15 }
 0x3de   : > { %2929 = vst [vmem:[%s4678_s15 + $0x50] sm:$0xff] %v3343_v34  ;;  %v2686_v35 = vmax.f32 %v2622_v11, 0.0  ;;  %v2623_v39 = vadd.f32 %v2559_v0, %v2401_v26  ;;  %v2403_v49 = vadd.f32 %v2402_v38, %v4665_v37  ;;  %v2570_v11 = vunpack.c.h.bf16 %v3281_v15 }
 0x3df   : > { %v2404_v57 = vpop.f32.mrf.mxu1 }
 0x3e0   : > { %v3344_v18 = vpack.c.bf16 %v2686_v35, %v2685_v47  ;;  %v2624_v51 = vadd.f32 %v2560_v3, %v2403_v49  ;;  %v2405_v54 = vadd.f32 %v2404_v57, %v4663_v10  ;;  %v2687_v62 = vmax.f32 %v2623_v39, 0.0  ;;  %v3283_v39 = vld [vmem:[%s3771_s16 + $0xa8] sm:$0xff] }
 0x3e1   : > { %v2406_v4 = vpop.f32.mrf.mxu1  ;;  %v2571_v3 = vunpack.c.l.bf16 %v3282_v36 }
 0x3e2   : > { %2930 = vst [vmem:[%s4678_s15 + $0x58] sm:$0xff] %v3344_v18  ;;  %v2688_v43 = vmax.f32 %v2624_v51, 0.0  ;;  %v2625_v6 = vadd.f32 %v2561_v45, %v2405_v54  ;;  %v2407_v52 = vadd.f32 %v2406_v4, %v4665_v37  ;;  %v2572_v51 = vunpack.c.h.bf16 %v3282_v36 }
 0x3e3   : > { %v2410_v63 = vpop.f32.mrf.mxu1 }
 0x3e4   : > { %v3345_v23 = vpack.c.bf16 %v2688_v43, %v2687_v62  ;;  %v2626_v14 = vadd.f32 %v2562_v2, %v2407_v52  ;;  %v2411_v12 = vadd.f32 %v2410_v63, %v4663_v10  ;;  %v2689_v31 = vmax.f32 %v2625_v6, 0.0  ;;  %v3284_v6 = vld [vmem:[%s3771_s16 + $0xb0] sm:$0xff] }
 0x3e5   : > { %v2412_v8 = vpop.f32.mrf.mxu1  ;;  %v2573_v2 = vunpack.c.l.bf16 %v3283_v39 }
 0x3e6   : > { %2931 = vst [vmem:[%s4678_s15 + $0x60] sm:$0xff] %v3345_v23  ;;  %v2690_v27 = vmax.f32 %v2626_v14, 0.0  ;;  %v2627_v42 = vadd.f32 %v2563_v21, %v2411_v12  ;;  %v2413_v24 = vadd.f32 %v2412_v8, %v4665_v37  ;;  %v2574_v14 = vunpack.c.h.bf16 %v3283_v39 }
 0x3e7   : > { %v2414_v50 = vpop.f32.mrf.mxu1 }
 0x3e8   : > { %v3346_v33 = vpack.c.bf16 %v2690_v27, %v2689_v31  ;;  %v2628_v40 = vadd.f32 %v2564_v7, %v2413_v24  ;;  %v2415_v56 = vadd.f32 %v2414_v50, %v4663_v10  ;;  %v2691_v60 = vmax.f32 %v2627_v42, 0.0  ;;  %v3285_v42 = vld [vmem:[%s3771_s16 + $0xb8] sm:$0xff] }
 0x3e9   : > { %v2416_v48 = vpop.f32.mrf.mxu1  ;;  %v2575_v7 = vunpack.c.l.bf16 %v3284_v6 }
 0x3ea   : > { %2932 = vst [vmem:[%s4678_s15 + $0x68] sm:$0xff] %v3346_v33  ;;  %v2692_v1 = vmax.f32 %v2628_v40, 0.0  ;;  %v2629_v17 = vadd.f32 %v2565_v30, %v2415_v56  ;;  %v2417_v59 = vadd.f32 %v2416_v48, %v4665_v37  ;;  %v2576_v40 = vunpack.c.h.bf16 %v3284_v6 }
 0x3eb   : > { %v2420_v53 = vpop.f32.mrf.mxu1 }
 0x3ec   : > { %v3347_v28 = vpack.c.bf16 %v2692_v1, %v2691_v60  ;;  %v2630_v44 = vadd.f32 %v2566_v22, %v2417_v59  ;;  %v2421_v16 = vadd.f32 %v2420_v53, %v4663_v10  ;;  %v2693_v5 = vmax.f32 %v2629_v17, 0.0  ;;  %v3286_v17 = vld [vmem:[%s3771_s16 + $0xc0] sm:$0xff] }
 0x3ed   : > { %v2422_v55 = vpop.f32.mrf.mxu1  ;;  %v2577_v22 = vunpack.c.l.bf16 %v3285_v42 }
 0x3ee   : > { %2933 = vst [vmem:[%s4678_s15 + $0x70] sm:$0xff] %v3347_v28  ;;  %v2694_v0 = vmax.f32 %v2630_v44, 0.0  ;;  %v2631_v19 = vadd.f32 %v2567_v61, %v2421_v16  ;;  %v2423_v25 = vadd.f32 %v2422_v55, %v4665_v37  ;;  %v2578_v44 = vunpack.c.h.bf16 %v3285_v42 }
 0x3ef   : > { %v2424_v13 = vpop.f32.mrf.mxu1 }
 0x3f0   : > { %v3348_v46 = vpack.c.bf16 %v2694_v0, %v2693_v5  ;;  %v2632_v32 = vadd.f32 %v2568_v58, %v2423_v25  ;;  %v2425_v34 = vadd.f32 %v2424_v13, %v4663_v10  ;;  %v2695_v38 = vmax.f32 %v2631_v19, 0.0  ;;  %v3287_v19 = vld [vmem:[%s3771_s16 + $0xc8] sm:$0xff] }
 0x3f1   : > { %v2426_v26 = vpop.f32.mrf.mxu1  ;;  %v2579_v58 = vunpack.c.l.bf16 %v3286_v17 }
 0x3f2   : > { %2934 = vst [vmem:[%s4678_s15 + $0x78] sm:$0xff] %v3348_v46  ;;  %v2696_v45 = vmax.f32 %v2632_v32, 0.0  ;;  %v2633_v47 = vadd.f32 %v2569_v41, %v2425_v34  ;;  %v2427_v35 = vadd.f32 %v2426_v26, %v4665_v37  ;;  %v2580_v32 = vunpack.c.h.bf16 %v3286_v17 }
 0x3f3   : > { %v2430_v49 = vpop.f32.mrf.mxu1 }
 0x3f4   : > { %v3349_v9 = vpack.c.bf16 %v2696_v45, %v2695_v38  ;;  %v2634_v57 = vadd.f32 %v2570_v11, %v2427_v35  ;;  %v2431_v18 = vadd.f32 %v2430_v49, %v4663_v10  ;;  %v2697_v4 = vmax.f32 %v2633_v47, 0.0  ;;  %v3288_v47 = vld [vmem:[%s3771_s16 + $0xd0] sm:$0xff] }
 0x3f5   : > { %v2432_v54 = vpop.f32.mrf.mxu1  ;;  %v2581_v11 = vunpack.c.l.bf16 %v3287_v19 }
 0x3f6   : > { %2935 = vst [vmem:[%s4678_s15 + $0x80] sm:$0xff] %v3349_v9  ;;  %v2698_v21 = vmax.f32 %v2634_v57, 0.0  ;;  %v2635_v62 = vadd.f32 %v2571_v3, %v2431_v18  ;;  %v2433_v43 = vadd.f32 %v2432_v54, %v4665_v37  ;;  %v2582_v57 = vunpack.c.h.bf16 %v3287_v19 }
 0x3f7   : > { %v2434_v52 = vpop.f32.mrf.mxu1 }
 0x3f8   : > { %v3350_v29 = vpack.c.bf16 %v2698_v21, %v2697_v4  ;;  %v2636_v63 = vadd.f32 %v2572_v51, %v2433_v43  ;;  %v2435_v23 = vadd.f32 %v2434_v52, %v4663_v10  ;;  %v2699_v8 = vmax.f32 %v2635_v62, 0.0  ;;  %v3289_v62 = vld [vmem:[%s3771_s16 + $0xd8] sm:$0xff] }
 0x3f9   : > { %v2436_v12 = vpop.f32.mrf.mxu1  ;;  %v2583_v51 = vunpack.c.l.bf16 %v3288_v47 }
 0x3fa   : > { %2936 = vst [vmem:[%s4678_s15 + $0x88] sm:$0xff] %v3350_v29  ;;  %v2700_v30 = vmax.f32 %v2636_v63, 0.0  ;;  %v2637_v31 = vadd.f32 %v2573_v2, %v2435_v23  ;;  %v2437_v27 = vadd.f32 %v2436_v12, %v4665_v37  ;;  %v2584_v63 = vunpack.c.h.bf16 %v3288_v47 }
 0x3fb   : > { %v2440_v24 = vpop.f32.mrf.mxu1 }
 0x3fc   : > { %v3351_v20 = vpack.c.bf16 %v2700_v30, %v2699_v8  ;;  %v2638_v50 = vadd.f32 %v2574_v14, %v2437_v27  ;;  %v2441_v33 = vadd.f32 %v2440_v24, %v4663_v10  ;;  %v2701_v48 = vmax.f32 %v2637_v31, 0.0  ;;  %v3290_v31 = vld [vmem:[%s3771_s16 + $0xe0] sm:$0xff] }
 0x3fd   : > { %v2442_v56 = vpop.f32.mrf.mxu1  ;;  %v2585_v14 = vunpack.c.l.bf16 %v3289_v62 }
 0x3fe   : > { %2937 = vst [vmem:[%s4678_s15 + $0x90] sm:$0xff] %v3351_v20  ;;  %v2702_v61 = vmax.f32 %v2638_v50, 0.0  ;;  %v2639_v60 = vadd.f32 %v2575_v7, %v2441_v33  ;;  %v2443_v1 = vadd.f32 %v2442_v56, %v4665_v37  ;;  %v2586_v50 = vunpack.c.h.bf16 %v3289_v62 }
 0x3ff   : > { %v2444_v59 = vpop.f32.mrf.mxu1 }
 0x400   : > { %v3352_v15 = vpack.c.bf16 %v2702_v61, %v2701_v48  ;;  %v2640_v53 = vadd.f32 %v2576_v40, %v2443_v1  ;;  %v2445_v28 = vadd.f32 %v2444_v59, %v4663_v10  ;;  %v2703_v55 = vmax.f32 %v2639_v60, 0.0  ;;  %v3291_v60 = vld [vmem:[%s3771_s16 + $0xe8] sm:$0xff] }
 0x401   : > { %v2446_v16 = vpop.f32.mrf.mxu1  ;;  %v2587_v40 = vunpack.c.l.bf16 %v3290_v31 }
 0x402   : > { %2938 = vst [vmem:[%s4678_s15 + $0x98] sm:$0xff] %v3352_v15  ;;  %v2704_v41 = vmax.f32 %v2640_v53, 0.0  ;;  %v2641_v5 = vadd.f32 %v2577_v22, %v2445_v28  ;;  %v2447_v0 = vadd.f32 %v2446_v16, %v4665_v37  ;;  %v2588_v53 = vunpack.c.h.bf16 %v3290_v31 }
 0x403   : > { %v2450_v25 = vpop.f32.mrf.mxu1 }
 0x404   : > { %v3353_v36 = vpack.c.bf16 %v2704_v41, %v2703_v55  ;;  %v2642_v13 = vadd.f32 %v2578_v44, %v2447_v0  ;;  %v2451_v46 = vadd.f32 %v2450_v25, %v4663_v10  ;;  %v2705_v26 = vmax.f32 %v2641_v5, 0.0  ;;  %v3292_v5 = vld [vmem:[%s3771_s16 + $0xf0] sm:$0xff] }
 0x405   : > { %v2452_v34 = vpop.f32.mrf.mxu1  ;;  %v2589_v44 = vunpack.c.l.bf16 %v3291_v60 }
 0x406   : > { %2939 = vst [vmem:[%s4678_s15 + $0xa0] sm:$0xff] %v3353_v36  ;;  %v2706_v3 = vmax.f32 %v2642_v13, 0.0  ;;  %v2643_v38 = vadd.f32 %v2579_v58, %v2451_v46  ;;  %v2453_v45 = vadd.f32 %v2452_v34, %v4665_v37  ;;  %v2590_v13 = vunpack.c.h.bf16 %v3291_v60 }
 0x407   : > { %v2454_v35 = vpop.f32.mrf.mxu1 }
 0x408   : > { %v3354_v39 = vpack.c.bf16 %v2706_v3, %v2705_v26  ;;  %v2644_v49 = vadd.f32 %v2580_v32, %v2453_v45  ;;  %v2455_v9 = vadd.f32 %v2454_v35, %v4663_v10  ;;  %v2707_v54 = vmax.f32 %v2643_v38, 0.0  ;;  %v3293_v38 = vld [vmem:[%s3771_s16 + $0xf8] sm:$0xff] }
 0x409   : > { %v2456_v18 = vpop.f32.mrf.mxu1  ;;  %v2591_v32 = vunpack.c.l.bf16 %v3292_v5 }
 0x40a   : > { %2940 = vst [vmem:[%s4678_s15 + $0xa8] sm:$0xff] %v3354_v39  ;;  %v2708_v2 = vmax.f32 %v2644_v49, 0.0  ;;  %v2645_v4 = vadd.f32 %v2581_v11, %v2455_v9  ;;  %v2457_v21 = vadd.f32 %v2456_v18, %v4665_v37  ;;  %v2592_v49 = vunpack.c.h.bf16 %v3292_v5 }
 0x40b   : > { %v2460_v43 = vpop.f32.mrf.mxu1 }
 0x40c   : > { %v3355_v6 = vpack.c.bf16 %v2708_v2, %v2707_v54  ;;  %v2646_v52 = vadd.f32 %v2582_v57, %v2457_v21  ;;  %v2461_v29 = vadd.f32 %v2460_v43, %v4663_v10  ;;  %v2709_v12 = vmax.f32 %v2645_v4, 0.0  ;;  %v3294_v4 = vld [vmem:[%s3771_s16 + $0x100] sm:$0xff] }
 0x40d   : > { %v2462_v23 = vpop.f32.mrf.mxu1  ;;  %v2593_v57 = vunpack.c.l.bf16 %v3293_v38 }
 0x40e   : > { %2941 = vst [vmem:[%s4678_s15 + $0xb0] sm:$0xff] %v3355_v6  ;;  %v2710_v7 = vmax.f32 %v2646_v52, 0.0  ;;  %v2647_v8 = vadd.f32 %v2583_v51, %v2461_v29  ;;  %v2463_v30 = vadd.f32 %v2462_v23, %v4665_v37  ;;  %v2594_v52 = vunpack.c.h.bf16 %v3293_v38 }
 0x40f   : > { %v2464_v27 = vpop.f32.mrf.mxu1 }
 0x410   : > { %v3356_v42 = vpack.c.bf16 %v2710_v7, %v2709_v12  ;;  %v2648_v24 = vadd.f32 %v2584_v63, %v2463_v30  ;;  %v2465_v20 = vadd.f32 %v2464_v27, %v4663_v10  ;;  %v2711_v56 = vmax.f32 %v2647_v8, 0.0  ;;  %v3295_v8 = vld [vmem:[%s3771_s16 + $0x108] sm:$0xff]  ;;  %s3365_s16 = sshll.u32 %s3636_s27, 12  ;;  %s3568_s27 = scalar_lea.vmem %s4805_s17, 4096 }
 0x411   : > { %v2466_v33 = vpop.f32.mrf.mxu1  ;;  %v2595_v63 = vunpack.c.l.bf16 %v3294_v4  ;;  %s4803_s20 = scalar_lea.hbm %s4862_s7, %s3365_s16  ;;  %p3569_p12 = scmp.ne.s32.totalorder %s4805_s17, %s3568_s27 }
 0x412   : > { %2942 = vst [vmem:[%s4678_s15 + $0xb8] sm:$0xff] %v3356_v42  ;;  %v2712_v22 = vmax.f32 %v2648_v24, 0.0  ;;  %v2649_v48 = vadd.f32 %v2585_v14, %v2465_v20  ;;  %v2467_v61 = vadd.f32 %v2466_v33, %v4665_v37  ;;  %v2596_v24 = vunpack.c.h.bf16 %v3294_v4  ;;  %p3576_p2 = scmp.lt.s32.totalorder %s3574_s30, %s3568_s27 }
 0x413   : > { %v2470_v1 = vpop.f32.mrf.mxu1  ;;  %p3570_p13 = pnand %p3569_p12, %p3731_p4 }
 0x414   : > { %v3357_v17 = vpack.c.bf16 %v2712_v22, %v2711_v56  ;;  %v2650_v59 = vadd.f32 %v2586_v50, %v2467_v61  ;;  %v2471_v15 = vadd.f32 %v2470_v1, %v4663_v10  ;;  %v2713_v16 = vmax.f32 %v2649_v48, 0.0  ;;  %p3577_p3 = por %p3576_p2, %p3575_p1 }
 0x415   : > { %v2472_v28 = vpop.f32.mrf.mxu1  ;;  %v2597_v50 = vunpack.c.l.bf16 %v3295_v8  ;;  %p3571_p0 = pneg %p3570_p13 }
 0x416   : > { %2943 = vst [vmem:[%s4678_s15 + $0xc0] sm:$0xff] %v3357_v17  ;;  %v2714_v58 = vmax.f32 %v2650_v59, 0.0  ;;  %v2651_v55 = vadd.f32 %v2587_v40, %v2471_v15  ;;  %v2473_v41 = vadd.f32 %v2472_v28, %v4665_v37  ;;  %v2598_v17 = vunpack.c.h.bf16 %v3295_v8 }
 0x417   : > { %v2474_v0 = vpop.f32.mrf.mxu1  ;;  %p3578_p5 = pnand %p3577_p3, %p3571_p0 }
 0x418   : > { %v3358_v19 = vpack.c.bf16 %v2714_v58, %v2713_v16  ;;  %v2652_v25 = vadd.f32 %v2588_v53, %v2473_v41  ;;  %v2475_v36 = vadd.f32 %v2474_v0, %v4663_v10  ;;  %v2715_v34 = vmax.f32 %v2651_v55, 0.0 }
 0x419   : > { %v2476_v46 = vpop.f32.mrf.mxu1 }
 0x41a   : > { %2944 = vst [vmem:[%s4678_s15 + $0xc8] sm:$0xff] %v3358_v19  ;;  %v2716_v11 = vmax.f32 %v2652_v25, 0.0  ;;  %v2653_v26 = vadd.f32 %v2589_v44, %v2475_v36  ;;  %v2477_v3 = vadd.f32 %v2476_v46, %v4665_v37 }
 0x41b   : > { %v2480_v45 = vpop.f32.mrf.mxu1 }
 0x41c   : > { %v3359_v47 = vpack.c.bf16 %v2716_v11, %v2715_v34  ;;  %v2654_v35 = vadd.f32 %v2590_v13, %v2477_v3  ;;  %v2481_v39 = vadd.f32 %v2480_v45, %v4663_v10  ;;  %v2717_v18 = vmax.f32 %v2653_v26, 0.0 }
 0x41d   : > { %v2482_v9 = vpop.f32.mrf.mxu1 }
 0x41e   : > { %2945 = vst [vmem:[%s4678_s15 + $0xd0] sm:$0xff] %v3359_v47  ;;  %v2718_v51 = vmax.f32 %v2654_v35, 0.0  ;;  %v2655_v54 = vadd.f32 %v2591_v32, %v2481_v39  ;;  %v2483_v2 = vadd.f32 %v2482_v9, %v4665_v37 }
 0x41f   : > { %v2484_v21 = vpop.f32.mrf.mxu1 }
 0x420   : > { %v3360_v62 = vpack.c.bf16 %v2718_v51, %v2717_v18  ;;  %v2656_v43 = vadd.f32 %v2592_v49, %v2483_v2  ;;  %v2485_v6 = vadd.f32 %v2484_v21, %v4663_v10  ;;  %v2719_v23 = vmax.f32 %v2655_v54, 0.0 }
 0x421   : > { %v2486_v29 = vpop.f32.mrf.mxu1 }
 0x422   : > { %2946 = vst [vmem:[%s4678_s15 + $0xd8] sm:$0xff] %v3360_v62  ;;  %v2720_v14 = vmax.f32 %v2656_v43, 0.0  ;;  %v2657_v12 = vadd.f32 %v2593_v57, %v2485_v6  ;;  %v2487_v7 = vadd.f32 %v2486_v29, %v4665_v37 }
 0x423   : > { %v2490_v30 = vpop.f32.mrf.mxu1 }
 0x424   : > { %v3361_v31 = vpack.c.bf16 %v2720_v14, %v2719_v23  ;;  %v2658_v27 = vadd.f32 %v2594_v52, %v2487_v7  ;;  %v2491_v42 = vadd.f32 %v2490_v30, %v4663_v10  ;;  %v2721_v33 = vmax.f32 %v2657_v12, 0.0 }
 0x425   : > { %v2492_v20 = vpop.f32.mrf.mxu1 }
 0x426   : > { %2947 = vst [vmem:[%s4678_s15 + $0xe0] sm:$0xff] %v3361_v31  ;;  %v2722_v40 = vmax.f32 %v2658_v27, 0.0  ;;  %v2659_v56 = vadd.f32 %v2595_v63, %v2491_v42  ;;  %v2493_v22 = vadd.f32 %v2492_v20, %v4665_v37 }
 0x427   : > { %v2494_v48 = vpop.f32.mrf.mxu1 }
 0x428   : > { %v3362_v61 = vpack.c.bf16 %v2722_v40, %v2721_v33  ;;  %v2660_v60 = vadd.f32 %v2596_v24, %v2493_v22  ;;  %v2495_v1 = vadd.f32 %v2494_v48, %v4663_v10  ;;  %v2723_v15 = vmax.f32 %v2659_v56, 0.0 }
 0x429   : > { %v2496_v59 = vpop.f32.mrf.mxu1 }
 0x42a   : > { %2948 = vst [vmem:[%s4678_s15 + $0xe8] sm:$0xff] %v3362_v61  ;;  %v2724_v53 = vmax.f32 %v2660_v60, 0.0  ;;  %v2661_v28 = vadd.f32 %v2597_v50, %v2495_v1  ;;  %v2497_v44 = vadd.f32 %v2496_v59, %v4665_v37 }
 0x42c   : > { %v3363_v16 = vpack.c.bf16 %v2724_v53, %v2723_v15  ;;  %v2662_v58 = vadd.f32 %v2598_v17, %v2497_v44  ;;  %v2725_v55 = vmax.f32 %v2661_v28, 0.0 }
 0x42e   : > { %2949 = vst [vmem:[%s4678_s15 + $0xf0] sm:$0xff] %v3363_v16  ;;  %v2726_v41 = vmax.f32 %v2662_v58, 0.0 }
 0x430   : > { %v3364_v10 = vpack.c.bf16 %v2726_v41, %v2725_v55 }
 0x432   : > { %2950 = vst [vmem:[%s4678_s15 + $0xf8] sm:$0xff] %v3364_v10 }
 0x433   : > { %3581 = shalt.err (!%p3578_p5)
}
 0x434   : > { %s3582_s8 = scalar_lea.hbm %s4803_s20, 4096  ;;  %s3586_s15 = scalar_lea.hbm %s4862_s7, 8192 }
 0x435   : > { %p3583_p6 = scmp.ne.s32.totalorder %s4803_s20, %s3582_s8  ;;  %p3587_p10 = scmp.lt.s32.totalorder %s4803_s20, %s4862_s7 }
 0x436   : > { %p3588_p11 = scmp.lt.s32.totalorder %s3586_s15, %s3582_s8 }
 0x437   : > { %p3584_p7 = pnand %p3583_p6, %p3731_p4 }
 0x438   : > { %p3589_p12 = por %p3588_p11, %p3587_p10 }
 0x439   : > { %p3585_p9 = pneg %p3584_p7 }
 0x43b   : > { %p3590_p13 = pnand %p3589_p12, %p3585_p9 }
 0x43d   : > { %3593 = shalt.err (!%p3590_p13)
}
 0x43e   : > { %s3649_s19 = smov 128   ;;  %s3650_s27 = smov 8  }
 0x43f   : > { %3391 = dma.vmem_to_hbm [thread:$0]  (%p3731_p4), %s4805_s17, 4096, %s4803_s20, %s4810_s21, %s3649_s19, %s3649_s19, %s3650_s27  }
 0x440 PF: > { %p3397_p0 = scmp.ge.s32.totalorder %s3644_s29, 2  ;;  %s2983_s22 = sand.u32 1, %s3624_s24  }
 0x441   : > { %s2984_s23 = scalar_lea.sflag [#allocation3], %s2983_s22 }
 0x442   : > { %p3394_p1 = pnand %p3397_p0, %p3738_p8 }
 0x444   : > { %p3395_p2 = pneg %p3394_p1 }
 0x446   : > { %3619 = dma.done.wait (%p3395_p2), %s2984_s23, 4096  }
 0x447   : > { %3621 = vsyncadd (%p3395_p2), %s2984_s23, 4294963200  ;;  %s20_s29 = sadd.s32 1, %s3644_s29   ;;  %s4869_s24 = smov %s3628_s25 }
 0x448   : > { %p17_p3 = scmp.ge.s32.totalorder %s20_s29, 4   ;;  %s4870_s25 = smov %s3632_s26 }
 0x449   : > { %s4871_s26 = smov %s3744_s14  ;;  %s4872_s27 = smov %s3640_s28 }
 0x44a   : > { %s4873_s28 = smov %s4875_s9  ;;  %19 = sbr.rel (!%p17_p3) target bundleno = 4 (0x4), region = 87 }
 0x44f   :  { %2989 = vsyncpa [#allocation3], 1 }
 0x450   :  { %2991 = vsyncpa [#allocation3 + $0x1], 1 }

</bundles_post_ra>
